<compile_context>
chip_gen: v7x
topology: tpu7x:2x2x1
jax: 0.10.0
libtpu: 0.0.40
codegen_flags: <defaults>
</compile_context>

<pallas_src>
import functools

import jax
import jax.numpy as jnp
from jax.experimental import pallas as pl
from jax.experimental.pallas import tpu as pltpu


# ------------------------------ helpers --------------------------------------

_SQRT_2_OVER_PI = 0.7978845608028654
_VMEM_BUDGET = 12 * 1024 * 1024     # conservative: fits v5e's 16 MiB default scoped VMEM
_VMEM_LIMIT = 28 * 1024 * 1024      # explicit Mosaic cap (<= v7x's 32 MiB scoped default)


def _gelu(x):
    # tanh-approx GELU (HF "gelu_new").
    # TODO(synk): exact erf-GELU (HF RoBERTa default) has no clean Mosaic lowering here;
    # tanh approximation differs by ~1e-3.
    return 0.5 * x * (1.0 + jnp.tanh(_SQRT_2_OVER_PI * (x + 0.044715 * x * x * x)))


def _pick_tile(dim, pref, multiple=8):
    """Largest divisor of `dim` that is <= pref, preferring (sub)lane-aligned multiples.

    Never falls back to the full dimension when dim > pref, so the VMEM budget check in
    each wrapper stays meaningful (review hardening)."""
    if dim <= pref:
        return dim
    fallback = 1
    for t in range(pref, 0, -1):
        if dim % t == 0:
            if t % multiple == 0:
                return t
            if fallback == 1:
                fallback = t
    return fallback


def _default_gelu_dtype():
    """bf16 GELU/tanh on chips with a bf16 EUP (v6e/v7x); f32 on older generations."""
    try:
        kind = jax.devices()[0].device_kind.lower()
    except Exception:  # pragma: no cover
        return jnp.float32
    if any(v in kind for v in ("v2", "v3", "v4", "v5")):
        return jnp.float32
    return jnp.bfloat16


def _cparams(dims):
    return pltpu.CompilerParams(dimension_semantics=dims,
                                vmem_limit_bytes=_VMEM_LIMIT)


# ------------------------------ dense (matmul + bias) --------------------------

def _dense_kernel_acc(x_ref, w_ref, b_ref, o_ref, acc_ref):
    """Tiled matmul with f32 accumulator; bias added on last K step."""
    @pl.when(pl.program_id(2) == 0)
    def _():
        acc_ref[...] = jnp.zeros_like(acc_ref)

    acc_ref[...] += jnp.dot(x_ref[...], w_ref[...],
                            preferred_element_type=jnp.float32)

    @pl.when(pl.program_id(2) == pl.num_programs(2) - 1)
    def _():
        o_ref[...] = (acc_ref[...] + b_ref[...]).astype(o_ref.dtype)


def _dense_kernel_noacc(x_ref, w_ref, b_ref, o_ref):
    """Single-pass matmul (full K per step): no scratch accumulator needed."""
    o_ref[...] = (jnp.dot(x_ref[...], w_ref[...], preferred_element_type=jnp.float32)
                  + b_ref[...]).astype(o_ref.dtype)


def dense(x, w, b, *, out_dtype=None, tm=512, tn=768, tk=1024):
    """x:[M,K] @ w:[K,N] + b:[N]  (bf16 MXU operands, f32 accumulate)."""
    M, K = x.shape
    _, N = w.shape
    out_dtype = out_dtype or x.dtype
    xb = jnp.dtype(x.dtype).itemsize
    wb = jnp.dtype(w.dtype).itemsize
    ob = jnp.dtype(out_dtype).itemsize

    def tiles(tm_p, tn_p, tk_p):
        return (_pick_tile(M, tm_p, 8),
                _pick_tile(N, tn_p, 128),
                _pick_tile(K, tk_p, 128))

    def vmem(tm_, tn_, tk_):
        f = 2 * (tm_ * tk_ * xb + tk_ * tn_ * wb + tn_ * 4 + tm_ * tn_ * ob)
        return f + (tm_ * tn_ * 4 if K // tk_ > 1 else 0)

    tm_p, tn_p, tk_p = tm, tn, tk
    tm_, tn_, tk_ = tiles(tm_p, tn_p, tk_p)
    while vmem(tm_, tn_, tk_) > _VMEM_BUDGET and max(tm_p, tn_p, tk_p) > 128:
        if tk_p >= max(tm_p, tn_p):
            tk_p //= 2
        elif tn_p >= tm_p:
            tn_p //= 2
        else:
            tm_p //= 2
        tm_, tn_, tk_ = tiles(tm_p, tn_p, tk_p)

    nk = K // tk_
    b2 = b.reshape(1, N).astype(jnp.float32)
    cost = pl.CostEstimate(flops=2 * M * N * K, transcendentals=0,
                           bytes_accessed=M * K * xb + K * N * wb + M * N * ob + N * 4)

    if nk == 1:
        return pl.pallas_call(
            _dense_kernel_noacc,
            out_shape=jax.ShapeDtypeStruct((M, N), out_dtype),
            grid=(M // tm_, N // tn_),
            in_specs=[
                pl.BlockSpec((tm_, tk_), lambda i, j: (i, 0)),
                pl.BlockSpec((tk_, tn_), lambda i, j: (0, j)),
                pl.BlockSpec((1, tn_), lambda i, j: (0, j)),
            ],
            out_specs=pl.BlockSpec((tm_, tn_), lambda i, j: (i, j)),
            compiler_params=_cparams(("parallel", "parallel")),
            cost_estimate=cost,
        )(x, w, b2)

    return pl.pallas_call(
        _dense_kernel_acc,
        out_shape=jax.ShapeDtypeStruct((M, N), out_dtype),
        grid=(M // tm_, N // tn_, nk),
        in_specs=[
            pl.BlockSpec((tm_, tk_), lambda i, j, k: (i, k)),
            pl.BlockSpec((tk_, tn_), lambda i, j, k: (k, j)),
            pl.BlockSpec((1, tn_), lambda i, j, k: (0, j)),
        ],
        out_specs=pl.BlockSpec((tm_, tn_), lambda i, j, k: (i, j)),
        scratch_shapes=[pltpu.VMEM((tm_, tn_), jnp.float32)],
        compiler_params=_cparams(("parallel", "parallel", "arbitrary")),
        cost_estimate=cost,
    )(x, w, b2)


# ------------------------------ flash attention --------------------------------

def _flash_attn_kernel(q_ref, k_ref, v_ref, m_ref, o_ref, mx_scr, l_scr, acc_scr):
    """One (batch, head, q-tile, kv-tile) step of flash attention.

    Online softmax state (m, l, acc) lives in f32 VMEM scratch; the output block is
    written exactly once, on the last kv step.  The 1/sqrt(head_dim) scale is folded
    into the Q projection weights.  Padded *query* rows still produce a valid-looking
    context (softmax over the unmasked keys); downstream NER loss ignores them,
    matching the reference module.
    """
    ki = pl.program_id(3)

    @pl.when(ki == 0)
    def _():
        mx_scr[...] = jnp.full_like(mx_scr, -1e30)
        l_scr[...] = jnp.zeros_like(l_scr)
        acc_scr[...] = jnp.zeros_like(acc_scr)

    s = jax.lax.dot_general(q_ref[...], k_ref[...], (((1,), (1,)), ((), ())),
                            preferred_element_type=jnp.float32)          # [tq, tkv]
    s = s + (m_ref[...].astype(jnp.float32) - 1.0) * 1e9                 # key mask bias

    m_new = jnp.maximum(mx_scr[...], jnp.max(s, axis=-1, keepdims=True))
    alpha = jnp.exp(mx_scr[...] - m_new)
    p = jnp.exp(s - m_new)
    l_scr[...] = alpha * l_scr[...] + jnp.sum(p, axis=-1, keepdims=True)
    acc_scr[...] = alpha * acc_scr[...] + jnp.dot(
        p.astype(v_ref.dtype), v_ref[...], preferred_element_type=jnp.float32)
    mx_scr[...] = m_new

    @pl.when(ki == pl.num_programs(3) - 1)
    def _():
        o_ref[...] = (acc_scr[...] *
                      pl.reciprocal(l_scr[...], approx=True)).astype(o_ref.dtype)


def flash_attention(q, k, v, mask, *, out_dtype, tq=256, tkv=512):
    """q,k,v: [B, H, S, Dh]; mask: [B, S] (1=keep, 0=pad) -> context [B, H, S, Dh]."""
    B, H, S, Dh = q.shape
    tq = _pick_tile(S, tq, 8)
    tkv = _pick_tile(S, tkv, 128 if S >= 128 else 8)
    nq, nkv = S // tq, S // tkv
    mask3 = mask.reshape(B, 1, S).astype(jnp.float32)

    cost = pl.CostEstimate(
        flops=4 * B * H * S * S * Dh,
        transcendentals=B * H * S * S,
        bytes_accessed=4 * B * H * S * Dh * 2 + B * S * 4)

    return pl.pallas_call(
        _flash_attn_kernel,
        out_shape=jax.ShapeDtypeStruct((B, H, S, Dh), out_dtype),
        grid=(B, H, nq, nkv),
        in_specs=[
            pl.BlockSpec((None, None, tq, Dh), lambda b, h, qi, ki: (b, h, qi, 0)),
            pl.BlockSpec((None, None, tkv, Dh), lambda b, h, qi, ki: (b, h, ki, 0)),
            pl.BlockSpec((None, None, tkv, Dh), lambda b, h, qi, ki: (b, h, ki, 0)),
            pl.BlockSpec((None, 1, tkv), lambda b, h, qi, ki: (b, 0, ki)),
        ],
        out_specs=pl.BlockSpec((None, None, tq, Dh), lambda b, h, qi, ki: (b, h, qi, 0)),
        scratch_shapes=[pltpu.VMEM((tq, 1), jnp.float32),
                        pltpu.VMEM((tq, 1), jnp.float32),
                        pltpu.VMEM((tq, Dh), jnp.float32)],
        compiler_params=_cparams(("parallel", "parallel", "parallel", "arbitrary")),
        cost_estimate=cost,
    )(q, k, v, mask3)


# -------------------- output projection + residual + LayerNorm -----------------

def _dense_res_ln_kernel(x_ref, w_ref, b_ref, r_ref, g_ref, beta_ref, o_ref,
                         acc_ref, *, eps):
    """(x @ w + b + residual) -> LayerNorm, with a K-accumulator; LN stats in f32."""
    @pl.when(pl.program_id(1) == 0)
    def _():
        acc_ref[...] = jnp.zeros_like(acc_ref)

    acc_ref[...] += jnp.dot(x_ref[...], w_ref[...],
                            preferred_element_type=jnp.float32)

    @pl.when(pl.program_id(1) == pl.num_programs(1) - 1)
    def _():
        h = acc_ref[...] + b_ref[...] + r_ref[...].astype(jnp.float32)
        mu = jnp.mean(h, axis=-1, keepdims=True)
        var = jnp.mean(jnp.square(h - mu), axis=-1, keepdims=True)
        y = (h - mu) * jax.lax.rsqrt(var + eps)
        o_ref[...] = (y * g_ref[...] + beta_ref[...]).astype(o_ref.dtype)


def dense_residual_layernorm(x, w, b, residual, gamma, beta, *, eps=1e-5,
                             out_dtype=None, tm=512, tk=1024):
    M, K = x.shape
    _, N = w.shape
    out_dtype = out_dtype or x.dtype
    xb = jnp.dtype(x.dtype).itemsize
    wb = jnp.dtype(w.dtype).itemsize
    ob = jnp.dtype(out_dtype).itemsize

    def tiles(tm_p, tk_p):
        return _pick_tile(M, tm_p, 8), _pick_tile(K, tk_p, 128 if K >= 128 else 8)

    def vmem(tm_, tk_):
        return (2 * (tm_ * tk_ * xb + tk_ * N * wb + 3 * N * 4
                     + tm_ * N * xb + tm_ * N * ob)
                + tm_ * N * 4)

    tm_p, tk_p = tm, tk
    tm_, tk_ = tiles(tm_p, tk_p)
    while vmem(tm_, tk_) > _VMEM_BUDGET and max(tm_p, tk_p) > 128:
        if tk_p >= tm_p:
            tk_p //= 2
        else:
            tm_p //= 2
        tm_, tk_ = tiles(tm_p, tk_p)

    cost = pl.CostEstimate(
        flops=2 * M * K * N + 10 * M * N,
        transcendentals=M,
        bytes_accessed=(M * K + 2 * M * N) * xb + K * N * wb + 3 * N * 4)

    kernel = functools.partial(_dense_res_ln_kernel, eps=eps)
    return pl.pallas_call(
        kernel,
        out_shape=jax.ShapeDtypeStruct((M, N), out_dtype),
        grid=(M // tm_, K // tk_),
        in_specs=[
            pl.BlockSpec((tm_, tk_), lambda i, k: (i, k)),
            pl.BlockSpec((tk_, N), lambda i, k: (k, 0)),
            pl.BlockSpec((1, N), lambda i, k: (0, 0)),
            pl.BlockSpec((tm_, N), lambda i, k: (i, 0)),
            pl.BlockSpec((1, N), lambda i, k: (0, 0)),
            pl.BlockSpec((1, N), lambda i, k: (0, 0)),
        ],
        out_specs=pl.BlockSpec((tm_, N), lambda i, k: (i, 0)),
        scratch_shapes=[pltpu.VMEM((tm_, N), jnp.float32)],
        compiler_params=_cparams(("parallel", "arbitrary")),
        cost_estimate=cost,
    )(x, w, b.reshape(1, N).astype(jnp.float32), residual,
      gamma.reshape(1, N).astype(jnp.float32), beta.reshape(1, N).astype(jnp.float32))


# ------------------------------ fused FFN block ---------------------------------

def _ffn_kernel(x_ref, w1_ref, b1_ref, w2_ref, b2_ref, g_ref, beta_ref, o_ref,
                acc_ref, *, eps, gelu_dtype):
    """Fused FFN: GELU(x@W1+b1) @ W2 (accumulated over FFN tiles) + b2 + x -> LayerNorm.

    The GELU intermediate lives only in VMEM/vregs; it is never written to HBM.
    The tanh polynomial runs in `gelu_dtype` (bf16 on v6e/v7x, f32 on v5e).
    """
    @pl.when(pl.program_id(1) == 0)
    def _():
        acc_ref[...] = jnp.zeros_like(acc_ref)

    h1 = (jnp.dot(x_ref[...], w1_ref[...], preferred_element_type=jnp.float32)
          + b1_ref[...])
    h1 = _gelu(h1.astype(gelu_dtype))
    acc_ref[...] += jnp.dot(h1.astype(w2_ref.dtype), w2_ref[...],
                            preferred_element_type=jnp.float32)

    @pl.when(pl.program_id(1) == pl.num_programs(1) - 1)
    def _():
        h = acc_ref[...] + b2_ref[...] + x_ref[...].astype(jnp.float32)
        mu = jnp.mean(h, axis=-1, keepdims=True)
        var = jnp.mean(jnp.square(h - mu), axis=-1, keepdims=True)
        y = (h - mu) * jax.lax.rsqrt(var + eps)
        o_ref[...] = (y * g_ref[...] + beta_ref[...]).astype(o_ref.dtype)


def fused_ffn(x, w1, b1, w2, b2, gamma, beta, *, eps=1e-5, out_dtype=None,
              gelu_dtype=jnp.float32, tm=512, tf=1024):
    M, D = x.shape
    _, F = w1.shape
    out_dtype = out_dtype or x.dtype
    xb = jnp.dtype(x.dtype).itemsize
    wb = jnp.dtype(w1.dtype).itemsize
    ob = jnp.dtype(out_dtype).itemsize

    def tiles(tm_p, tf_p):
        return _pick_tile(M, tm_p, 8), _pick_tile(F, tf_p, 128 if F >= 128 else 8)

    def vmem(tm_, tf_):
        return (2 * (tm_ * D * xb + D * tf_ * wb + tf_ * 4 + tf_ * D * wb
                     + 3 * D * 4 + tm_ * D * ob)
                + tm_ * D * 4            # f32 accumulator scratch
                + tm_ * tf_ * 4)         # in-kernel GELU intermediate

    tm_p, tf_p = tm, tf
    tm_, tf_ = tiles(tm_p, tf_p)
    while vmem(tm_, tf_) > _VMEM_BUDGET and max(tm_p, tf_p) > 128:
        if tf_p >= tm_p:
            tf_p //= 2
        else:
            tm_p //= 2
        tm_, tf_ = tiles(tm_p, tf_p)

    cost = pl.CostEstimate(
        flops=4 * M * D * F + 10 * M * D,
        transcendentals=M * F + M,
        bytes_accessed=2 * M * D * xb + 2 * D * F * wb + (F + 3 * D) * 4)

    kernel = functools.partial(_ffn_kernel, eps=eps, gelu_dtype=gelu_dtype)
    return pl.pallas_call(
        kernel,
        out_shape=jax.ShapeDtypeStruct((M, D), out_dtype),
        grid=(M // tm_, F // tf_),
        in_specs=[
            pl.BlockSpec((tm_, D), lambda i, f: (i, 0)),     # x (also the residual)
            pl.BlockSpec((D, tf_), lambda i, f: (0, f)),     # W1 tile
            pl.BlockSpec((1, tf_), lambda i, f: (0, f)),     # b1 tile
            pl.BlockSpec((tf_, D), lambda i, f: (f, 0)),     # W2 tile
            pl.BlockSpec((1, D), lambda i, f: (0, 0)),       # b2
            pl.BlockSpec((1, D), lambda i, f: (0, 0)),       # gamma
            pl.BlockSpec((1, D), lambda i, f: (0, 0)),       # beta
        ],
        out_specs=pl.BlockSpec((tm_, D), lambda i, f: (i, 0)),
        scratch_shapes=[pltpu.VMEM((tm_, D), jnp.float32)],
        compiler_params=_cparams(("parallel", "arbitrary")),
        cost_estimate=cost,
    )(x, w1, b1.reshape(1, F).astype(jnp.float32), w2,
      b2.reshape(1, D).astype(jnp.float32),
      gamma.reshape(1, D).astype(jnp.float32), beta.reshape(1, D).astype(jnp.float32))


# ------------------------------ plain LayerNorm ---------------------------------

def _ln_kernel(x_ref, g_ref, b_ref, o_ref, *, eps):
    h = x_ref[...].astype(jnp.float32)
    mu = jnp.mean(h, axis=-1, keepdims=True)
    var = jnp.mean(jnp.square(h - mu), axis=-1, keepdims=True)
    o_ref[...] = (((h - mu) * jax.lax.rsqrt(var + eps)) * g_ref[...]
                  + b_ref[...]).astype(o_ref.dtype)


def layernorm(x, gamma, beta, *, eps=1e-5, out_dtype=None, tm=512):
    """Plain LayerNorm over the last dim, tiled over rows (embedding LN: no residual)."""
    M, D = x.shape
    out_dtype = out_dtype or x.dtype
    tm = _pick_tile(M, tm, 8)
    xb = jnp.dtype(x.dtype).itemsize
    ob = jnp.dtype(out_dtype).itemsize
    cost = pl.CostEstimate(flops=10 * M * D, transcendentals=M,
                           bytes_accessed=M * D * (xb + ob) + 2 * D * 4)
    kernel = functools.partial(_ln_kernel, eps=eps)
    return pl.pallas_call(
        kernel,
        out_shape=jax.ShapeDtypeStruct((M, D), out_dtype),
        grid=(M // tm,),
        in_specs=[
            pl.BlockSpec((tm, D), lambda i: (i, 0)),
            pl.BlockSpec((1, D), lambda i: (0, 0)),
            pl.BlockSpec((1, D), lambda i: (0, 0)),
        ],
        out_specs=pl.BlockSpec((tm, D), lambda i: (i, 0)),
        compiler_params=_cparams(("parallel",)),
        cost_estimate=cost,
    )(x, gamma.reshape(1, D).astype(jnp.float32), beta.reshape(1, D).astype(jnp.float32))


# ------------------------------ model wrapper ---------------------------------

def init_params(key, *, vocab_size, hidden, num_layers, num_heads, ffn_dim,
                max_pos, type_vocab, num_classes):
    """Synthetic deterministic weights, laid out for the fused kernels.

    * Wq|Wk|Wv are pre-concatenated to a single [D, 3D] matrix (one matmul per layer),
      with 1/sqrt(head_dim) folded into the Q slice (mathematically identical to
      scaling the attention scores).
    * MXU-facing weights are stored as bf16; biases / LN params stay f32.
    * The logits head's class dim is zero-padded to 128 lanes; sliced after the kernel.
    """
    head_dim = hidden // num_heads
    scale = 1.0 / (head_dim ** 0.5)
    cnt = [0]

    def nxt(shape, s=0.02):
        cnt[0] += 1
        return s * jax.random.normal(jax.random.fold_in(key, cnt[0]),
                                     shape, dtype=jnp.float32)

    nc_pad = ((num_classes + 127) // 128) * 128
    w_logits = jnp.zeros((hidden, nc_pad), jnp.float32)
    w_logits = w_logits.at[:, :num_classes].set(nxt((hidden, num_classes)))

    params = {
        "word_emb": nxt((vocab_size, hidden)),
        "pos_emb": nxt((max_pos, hidden)),
        "type_emb": nxt((type_vocab, hidden)),
        "emb_ln_g": jnp.ones((hidden,), jnp.float32),
        "emb_ln_b": jnp.zeros((hidden,), jnp.float32),
        "layers": [],
        "w_logits": w_logits.astype(jnp.bfloat16),
        "b_logits": jnp.zeros((nc_pad,), jnp.float32),
    }
    for _ in range(num_layers):
        wq, wk, wv = (nxt((hidden, hidden)) for _ in range(3))
        bq = bk = bv = jnp.zeros((hidden,), jnp.float32)
        wqkv = jnp.concatenate([wq * scale, wk, wv], axis=1).astype(jnp.bfloat16)
        bqkv = jnp.concatenate([bq * scale, bk, bv], axis=0)
        params["layers"].append({
            "wqkv": wqkv, "bqkv": bqkv,
            "wo": nxt((hidden, hidden)).astype(jnp.bfloat16),
            "bo": jnp.zeros((hidden,), jnp.float32),
            "ln1_g": jnp.ones((hidden,), jnp.float32),
            "ln1_b": jnp.zeros((hidden,), jnp.float32),
            "w1": nxt((hidden, ffn_dim)).astype(jnp.bfloat16),
            "b1": jnp.zeros((ffn_dim,), jnp.float32),
            "w2": nxt((ffn_dim, hidden)).astype(jnp.bfloat16),
            "b2": jnp.zeros((hidden,), jnp.float32),
            "ln2_g": jnp.ones((hidden,), jnp.float32),
            "ln2_b": jnp.zeros((hidden,), jnp.float32),
        })
    return params


def ner_transformer_forward(params, tokens, token_type_ids, *, pad_idx, num_heads,
                            num_classes, gelu_dtype=jnp.float32):
    """Mirrors NERTransformer.forward:
       attention_mask = (tokens != pad_idx); features = last hidden state; logits head."""
    B, S = tokens.shape
    D = params["word_emb"].shape[1]
    H = num_heads
    Dh = D // H

    attn_mask = (tokens != pad_idx)
    mask_f = attn_mask.astype(jnp.float32)

    # RoBERTa-style position ids: cumsum of the mask, offset by pad_idx.
    mask_i = attn_mask.astype(jnp.int32)
    pos_ids = jnp.cumsum(mask_i, axis=1) * mask_i + pad_idx

    emb = (jnp.take(params["word_emb"], tokens, axis=0)
           + jnp.take(params["pos_emb"], pos_ids, axis=0)
           + jnp.take(params["type_emb"], token_type_ids, axis=0))      # [B,S,D] f32
    # bf16 cast before the LN kernel halves the HBM traffic of the embedding slab;
    # LN statistics stay f32 inside the kernel.
    h2 = layernorm(emb.astype(jnp.bfloat16).reshape(B * S, D),
                   params["emb_ln_g"], params["emb_ln_b"],
                   out_dtype=jnp.bfloat16)                              # [B*S, D] bf16

    for layer in params["layers"]:
        # Fused QKV projection: one [M,D]@[D,3D] matmul (scale folded into the Q slice).
        qkv = dense(h2, layer["wqkv"], layer["bqkv"], out_dtype=jnp.bfloat16)
        # Head-major [B, H, S, Dh] views for the flash kernel (wrapper-side layout
        # plumbing; the kernel itself reads contiguous per-head blocks).
        qkv5 = qkv.reshape(B, S, 3, H, Dh)
        q = jnp.transpose(qkv5[:, :, 0], (0, 2, 1, 3))
        k = jnp.transpose(qkv5[:, :, 1], (0, 2, 1, 3))
        v = jnp.transpose(qkv5[:, :, 2], (0, 2, 1, 3))
        ctx = flash_attention(q, k, v, mask_f, out_dtype=jnp.bfloat16)  # [B,H,S,Dh]
        ctx = jnp.transpose(ctx, (0, 2, 1, 3)).reshape(B * S, D)
        # Output projection + residual + LayerNorm fused.
        h2 = dense_residual_layernorm(ctx, layer["wo"], layer["bo"], h2,
                                      layer["ln1_g"], layer["ln1_b"],
                                      out_dtype=jnp.bfloat16)
        # Fused FFN (GELU intermediate stays in VMEM) + residual + LayerNorm.
        h2 = fused_ffn(h2, layer["w1"], layer["b1"], layer["w2"], layer["b2"],
                       layer["ln2_g"], layer["ln2_b"], out_dtype=jnp.bfloat16,
                       gelu_dtype=gelu_dtype)

    # Token-classification head: lane-padded to 128 classes inside, sliced here.
    logits = dense(h2, params["w_logits"], params["b_logits"], out_dtype=jnp.float32)
    return logits[:, :num_classes].reshape(B, S, num_classes)


# ----------------------------------- main --------------------------------------

if __name__ == "__main__":
    # TODO(synk): pretrained HF checkpoint loading (AutoModel.from_pretrained) has no
    # Pallas equivalent; weights are synthetic + deterministic instead.
    # NOTE: toy shapes for the correctness run; tile/budget logic targets production
    # RoBERTa dims (D=768, H=12, Dh=64, FFN=3072, S>=128).
    B, S = 2, 8
    VOCAB, HIDDEN, HEADS, FFN, LAYERS = 100, 32, 2, 64, 2
    MAX_POS, TYPE_VOCAB, NUM_CLASSES = 64, 2, 1
    PAD_IDX = 1  # 'roberta' in model name -> pad_idx = 1

    key = jax.random.PRNGKey(0)
    params = init_params(key, vocab_size=VOCAB, hidden=HIDDEN, num_layers=LAYERS,
                         num_heads=HEADS, ffn_dim=FFN, max_pos=MAX_POS,
                         type_vocab=TYPE_VOCAB, num_classes=NUM_CLASSES)

    tokens = jax.random.randint(jax.random.fold_in(key, 999), (B, S), 2, VOCAB,
                                dtype=jnp.int32)
    tokens = tokens.at[1, 6:].set(PAD_IDX)  # pad the tail of the second sentence
    token_type_ids = jnp.zeros((B, S), dtype=jnp.int32)

    fwd = jax.jit(functools.partial(ner_transformer_forward, pad_idx=PAD_IDX,
                                    num_heads=HEADS, num_classes=NUM_CLASSES,
                                    gelu_dtype=_default_gelu_dtype()))
    logits = jax.block_until_ready(fwd(params, tokens, token_type_ids))

    assert logits.shape == (B, S, NUM_CLASSES)
    assert bool(jnp.all(jnp.isfinite(logits)))
    print("KERNEL_OK")
</pallas_src>

<mosaic_0001>
module attributes {stable_mosaic.version = 11 : i64} {
  func.func @_dense_kernel_noacc(%arg0: i32, %arg1: i32, %arg2: memref<16x32xbf16, #tpu.memory_space<vmem>>, %arg3: memref<32x96xbf16, #tpu.memory_space<vmem>>, %arg4: memref<1x96xf32, #tpu.memory_space<vmem>>, %arg5: memref<16x96xbf16, #tpu.memory_space<vmem>>) attributes {dimension_semantics = [#tpu.dimension_semantics<parallel>, #tpu.dimension_semantics<parallel>], iteration_bounds = array<i64: 1, 1>, scalar_prefetch = 0 : i64, scratch_operands = 0 : i64, tpu.core_type = #tpu.core_type<tc>, window_params = [{transform_indices = @transform_0, window_bounds = array<i64: 16, 32>}, {transform_indices = @transform_1, window_bounds = array<i64: 32, 96>}, {transform_indices = @transform_2, window_bounds = array<i64: 1, 96>}, {transform_indices = @transform_3, window_bounds = array<i64: 16, 96>}]} {
    %c0 = arith.constant 0 : index
    %c0_0 = arith.constant 0 : index
    %0 = vector.load %arg2[%c0, %c0_0] : memref<16x32xbf16, #tpu.memory_space<vmem>>, vector<16x32xbf16>
    %c0_1 = arith.constant 0 : index
    %c0_2 = arith.constant 0 : index
    %1 = vector.load %arg3[%c0_1, %c0_2] : memref<32x96xbf16, #tpu.memory_space<vmem>>, vector<32x96xbf16>
    %cst = arith.constant dense<0.000000e+00> : vector<16x96xf32>
    %2 = tpu.matmul %0, %1, %cst {dimension_numbers = #tpu.dot_dimension_numbers<[1], [0], [0], [1], [0, 0, 1, 1], [], []>} : vector<16x32xbf16>, vector<32x96xbf16>, vector<16x96xf32> -> vector<16x96xf32>
    %c0_3 = arith.constant 0 : index
    %c0_4 = arith.constant 0 : index
    %3 = vector.load %arg4[%c0_3, %c0_4] : memref<1x96xf32, #tpu.memory_space<vmem>>, vector<1x96xf32>
    %4 = vector.broadcast %3 : vector<1x96xf32> to vector<16x96xf32>
    %5 = arith.addf %2, %4 : vector<16x96xf32>
    %6 = arith.truncf %5 : vector<16x96xf32> to vector<16x96xbf16>
    %c0_5 = arith.constant 0 : index
    %c0_6 = arith.constant 0 : index
    %7 = vector.load %arg5[%c0_5, %c0_6] : memref<16x96xbf16, #tpu.memory_space<vmem>>, vector<16x96xbf16>
    tpu.vector_store %arg5[%c0_5, %c0_6], %6 {strides = array<i32>} : memref<16x96xbf16, #tpu.memory_space<vmem>>, vector<16x96xbf16>,
    return
  }
  func.func @transform_0(%arg0: i32, %arg1: i32) -> (i32, i32) {
    %c0_i32 = arith.constant 0 : i32
    %c0_i32_0 = arith.constant 0 : i32
    return %arg0, %c0_i32 : i32, i32
  }
  func.func @transform_1(%arg0: i32, %arg1: i32) -> (i32, i32) {
    %c0_i32 = arith.constant 0 : i32
    %c0_i32_0 = arith.constant 0 : i32
    return %c0_i32, %arg1 : i32, i32
  }
  func.func @transform_2(%arg0: i32, %arg1: i32) -> (i32, i32) {
    %c0_i32 = arith.constant 0 : i32
    %c0_i32_0 = arith.constant 0 : i32
    return %c0_i32, %arg1 : i32, i32
  }
  func.func @transform_3(%arg0: i32, %arg1: i32) -> (i32, i32) {
    %c0_i32 = arith.constant 0 : i32
    return %arg0, %arg1 : i32, i32
  }
}

module attributes {stable_mosaic.version = 11 : i64} {
  func.func @_ln_kernel(%arg0: i32, %arg1: memref<16x32xbf16, #tpu.memory_space<vmem>>, %arg2: memref<1x32xf32, #tpu.memory_space<vmem>>, %arg3: memref<1x32xf32, #tpu.memory_space<vmem>>, %arg4: memref<16x32xbf16, #tpu.memory_space<vmem>>) attributes {dimension_semantics = [#tpu.dimension_semantics<parallel>], iteration_bounds = array<i64: 1>, scalar_prefetch = 0 : i64, scratch_operands = 0 : i64, tpu.core_type = #tpu.core_type<tc>, window_params = [{transform_indices = @transform_0, window_bounds = array<i64: 16, 32>}, {pipeline_mode = #tpu.pipeline_mode<synchronous>, transform_indices = @transform_1, window_bounds = array<i64: 1, 32>}, {pipeline_mode = #tpu.pipeline_mode<synchronous>, transform_indices = @transform_2, window_bounds = array<i64: 1, 32>}, {transform_indices = @transform_3, window_bounds = array<i64: 16, 32>}]} {
    %c0 = arith.constant 0 : index
    %c0_0 = arith.constant 0 : index
    %0 = vector.load %arg1[%c0, %c0_0] : memref<16x32xbf16, #tpu.memory_space<vmem>>, vector<16x32xbf16>
    %1 = arith.extf %0 : vector<16x32xbf16> to vector<16x32xf32>
    %cst = arith.constant dense<0.000000e+00> : vector<16xf32>
    %2 = vector.multi_reduction <add>, %1, %cst [1] : vector<16x32xf32> to vector<16xf32>
    %3 = vector.shape_cast %2 : vector<16xf32> to vector<16x1xf32>
    %cst_1 = arith.constant 3.200000e+01 : f32
    %4 = vector.broadcast %cst_1 : f32 to vector<16x1xf32>
    %5 = arith.divf %3, %4 : vector<16x1xf32>
    %6 = vector.broadcast %5 : vector<16x1xf32> to vector<16x32xf32>
    %7 = arith.subf %1, %6 : vector<16x32xf32>
    %8 = arith.mulf %7, %7 : vector<16x32xf32>
    %cst_2 = arith.constant dense<0.000000e+00> : vector<16xf32>
    %9 = vector.multi_reduction <add>, %8, %cst_2 [1] : vector<16x32xf32> to vector<16xf32>
    %10 = vector.shape_cast %9 : vector<16xf32> to vector<16x1xf32>
    %cst_3 = arith.constant 3.200000e+01 : f32
    %11 = vector.broadcast %cst_3 : f32 to vector<16x1xf32>
    %12 = arith.divf %10, %11 : vector<16x1xf32>
    %13 = vector.broadcast %5 : vector<16x1xf32> to vector<16x32xf32>
    %14 = arith.subf %1, %13 : vector<16x32xf32>
    %cst_4 = arith.constant 9.99999974E-6 : f32
    %15 = vector.broadcast %cst_4 : f32 to vector<16x1xf32>
    %16 = arith.addf %12, %15 : vector<16x1xf32>
    %17 = math.rsqrt %16 : vector<16x1xf32>
    %18 = vector.broadcast %17 : vector<16x1xf32> to vector<16x32xf32>
    %19 = arith.mulf %14, %18 : vector<16x32xf32>
    %c0_5 = arith.constant 0 : index
    %c0_6 = arith.constant 0 : index
    %20 = vector.load %arg2[%c0_5, %c0_6] : memref<1x32xf32, #tpu.memory_space<vmem>>, vector<1x32xf32>
    %21 = vector.broadcast %20 : vector<1x32xf32> to vector<16x32xf32>
    %22 = arith.mulf %19, %21 : vector<16x32xf32>
    %c0_7 = arith.constant 0 : index
    %c0_8 = arith.constant 0 : index
    %23 = vector.load %arg3[%c0_7, %c0_8] : memref<1x32xf32, #tpu.memory_space<vmem>>, vector<1x32xf32>
    %24 = vector.broadcast %23 : vector<1x32xf32> to vector<16x32xf32>
    %25 = arith.addf %22, %24 : vector<16x32xf32>
    %26 = arith.truncf %25 : vector<16x32xf32> to vector<16x32xbf16>
    %c0_9 = arith.constant 0 : index
    %c0_10 = arith.constant 0 : index
    %27 = vector.load %arg4[%c0_9, %c0_10] : memref<16x32xbf16, #tpu.memory_space<vmem>>, vector<16x32xbf16>
    tpu.vector_store %arg4[%c0_9, %c0_10], %26 {strides = array<i32>} : memref<16x32xbf16, #tpu.memory_space<vmem>>, vector<16x32xbf16>,
    return
  }
  func.func @transform_0(%arg0: i32) -> (i32, i32) {
    %c0_i32 = arith.constant 0 : i32
    %c0_i32_0 = arith.constant 0 : i32
    return %arg0, %c0_i32 : i32, i32
  }
  func.func @transform_1(%arg0: i32) -> (i32, i32) {
    %c0_i32 = arith.constant 0 : i32
    %c0_i32_0 = arith.constant 0 : i32
    %c0_i32_1 = arith.constant 0 : i32
    return %c0_i32, %c0_i32_0 : i32, i32
  }
  func.func @transform_2(%arg0: i32) -> (i32, i32) {
    %c0_i32 = arith.constant 0 : i32
    %c0_i32_0 = arith.constant 0 : i32
    %c0_i32_1 = arith.constant 0 : i32
    return %c0_i32, %c0_i32_0 : i32, i32
  }
  func.func @transform_3(%arg0: i32) -> (i32, i32) {
    %c0_i32 = arith.constant 0 : i32
    %c0_i32_0 = arith.constant 0 : i32
    return %arg0, %c0_i32 : i32, i32
  }
}

module attributes {stable_mosaic.version = 11 : i64} {
  func.func @_flash_attn_kernel(%arg0: i32, %arg1: i32, %arg2: i32, %arg3: i32, %arg4: memref<1x1x8x16xbf16, #tpu.memory_space<vmem>>, %arg5: memref<1x1x8x16xbf16, #tpu.memory_space<vmem>>, %arg6: memref<1x1x8x16xbf16, #tpu.memory_space<vmem>>, %arg7: memref<1x1x8xf32, #tpu.memory_space<vmem>>, %arg8: memref<1x1x8x16xbf16, #tpu.memory_space<vmem>>, %arg9: memref<8x1xf32, #tpu.memory_space<vmem>>, %arg10: memref<8x1xf32, #tpu.memory_space<vmem>>, %arg11: memref<8x16xf32, #tpu.memory_space<vmem>>) attributes {dimension_semantics = [#tpu.dimension_semantics<parallel>, #tpu.dimension_semantics<parallel>, #tpu.dimension_semantics<parallel>, #tpu.dimension_semantics<arbitrary>], iteration_bounds = array<i64: 2, 2, 1, 1>, scalar_prefetch = 0 : i64, scratch_operands = 3 : i64, tpu.core_type = #tpu.core_type<tc>, window_params = [{transform_indices = @transform_0, window_bounds = array<i64: 1, 1, 8, 16>}, {transform_indices = @transform_1, window_bounds = array<i64: 1, 1, 8, 16>}, {transform_indices = @transform_2, window_bounds = array<i64: 1, 1, 8, 16>}, {transform_indices = @transform_3, window_bounds = array<i64: 1, 1, 8>}, {transform_indices = @transform_4, window_bounds = array<i64: 1, 1, 8, 16>}]} {
    %c0_i32 = arith.constant 0 : i32
    %0 = arith.cmpi eq, %arg3, %c0_i32 : i32
    %1 = arith.extui %0 : i1 to i32
    %c0_i32_0 = arith.constant 0 : i32
    %2 = arith.cmpi ne, %1, %c0_i32_0 : i32
    scf.if %2 {
      %cst_36 = arith.constant -1.000000e+30 : f32
      %45 = vector.broadcast %cst_36 : f32 to vector<8x1xf32>
      %c0_37 = arith.constant 0 : index
      %c0_38 = arith.constant 0 : index
      %46 = vector.load %arg9[%c0_37, %c0_38] : memref<8x1xf32, #tpu.memory_space<vmem>>, vector<8x1xf32>
      tpu.vector_store %arg9[%c0_37, %c0_38], %45 {strides = array<i32>} : memref<8x1xf32, #tpu.memory_space<vmem>>, vector<8x1xf32>,
      %cst_39 = arith.constant 0.000000e+00 : f32
      %47 = vector.broadcast %cst_39 : f32 to vector<8x1xf32>
      %c0_40 = arith.constant 0 : index
      %c0_41 = arith.constant 0 : index
      %48 = vector.load %arg10[%c0_40, %c0_41] : memref<8x1xf32, #tpu.memory_space<vmem>>, vector<8x1xf32>
      tpu.vector_store %arg10[%c0_40, %c0_41], %47 {strides = array<i32>} : memref<8x1xf32, #tpu.memory_space<vmem>>, vector<8x1xf32>,
      %cst_42 = arith.constant 0.000000e+00 : f32
      %49 = vector.broadcast %cst_42 : f32 to vector<8x16xf32>
      %c0_43 = arith.constant 0 : index
      %c0_44 = arith.constant 0 : index
      %50 = vector.load %arg11[%c0_43, %c0_44] : memref<8x16xf32, #tpu.memory_space<vmem>>, vector<8x16xf32>
      tpu.vector_store %arg11[%c0_43, %c0_44], %49 {strides = array<i32>} : memref<8x16xf32, #tpu.memory_space<vmem>>, vector<8x16xf32>,
    } else {
    }
    %c0 = arith.constant 0 : index
    %c0_1 = arith.constant 0 : index
    %c0_2 = arith.constant 0 : index
    %c0_3 = arith.constant 0 : index
    %3 = vector.load %arg4[%c0, %c0_1, %c0_2, %c0_3] : memref<1x1x8x16xbf16, #tpu.memory_space<vmem>>, vector<1x1x8x16xbf16>
    %4 = vector.shape_cast %3 : vector<1x1x8x16xbf16> to vector<8x16xbf16>
    %c0_4 = arith.constant 0 : index
    %c0_5 = arith.constant 0 : index
    %c0_6 = arith.constant 0 : index
    %c0_7 = arith.constant 0 : index
    %5 = vector.load %arg5[%c0_4, %c0_5, %c0_6, %c0_7] : memref<1x1x8x16xbf16, #tpu.memory_space<vmem>>, vector<1x1x8x16xbf16>
    %6 = vector.shape_cast %5 : vector<1x1x8x16xbf16> to vector<8x16xbf16>
    %cst = arith.constant dense<0.000000e+00> : vector<8x8xf32>
    %7 = tpu.matmul %4, %6, %cst {dimension_numbers = #tpu.dot_dimension_numbers<[1], [1], [0], [0], [0, 0, 1, 0], [], []>} : vector<8x16xbf16>, vector<8x16xbf16>, vector<8x8xf32> -> vector<8x8xf32>
    %c0_8 = arith.constant 0 : index
    %c0_9 = arith.constant 0 : index
    %c0_10 = arith.constant 0 : index
    %8 = vector.load %arg7[%c0_8, %c0_9, %c0_10] : memref<1x1x8xf32, #tpu.memory_space<vmem>>, vector<1x1x8xf32>
    %9 = vector.shape_cast %8 : vector<1x1x8xf32> to vector<1x8xf32>
    %cst_11 = arith.constant 1.000000e+00 : f32
    %10 = vector.broadcast %cst_11 : f32 to vector<1x8xf32>
    %11 = arith.subf %9, %10 : vector<1x8xf32>
    %cst_12 = arith.constant 1.000000e+09 : f32
    %12 = vector.broadcast %cst_12 : f32 to vector<1x8xf32>
    %13 = arith.mulf %11, %12 : vector<1x8xf32>
    %14 = vector.broadcast %13 : vector<1x8xf32> to vector<8x8xf32>
    %15 = arith.addf %7, %14 : vector<8x8xf32>
    %c0_13 = arith.constant 0 : index
    %c0_14 = arith.constant 0 : index
    %16 = vector.load %arg9[%c0_13, %c0_14] : memref<8x1xf32, #tpu.memory_space<vmem>>, vector<8x1xf32>
    %cst_15 = arith.constant dense<0xFF800000> : vector<8xf32>
    %17 = vector.multi_reduction <maximumf>, %15, %cst_15 [1] : vector<8x8xf32> to vector<8xf32>
    %18 = vector.shape_cast %17 : vector<8xf32> to vector<8x1xf32>
    %19 = arith.maximumf %16, %18 : vector<8x1xf32>
    %c0_16 = arith.constant 0 : index
    %c0_17 = arith.constant 0 : index
    %20 = vector.load %arg9[%c0_16, %c0_17] : memref<8x1xf32, #tpu.memory_space<vmem>>, vector<8x1xf32>
    %21 = arith.subf %20, %19 : vector<8x1xf32>
    %22 = math.exp %21 : vector<8x1xf32>
    %23 = vector.broadcast %19 : vector<8x1xf32> to vector<8x8xf32>
    %24 = arith.subf %15, %23 : vector<8x8xf32>
    %25 = math.exp %24 : vector<8x8xf32>
    %c0_18 = arith.constant 0 : index
    %c0_19 = arith.constant 0 : index
    %26 = vector.load %arg10[%c0_18, %c0_19] : memref<8x1xf32, #tpu.memory_space<vmem>>, vector<8x1xf32>
    %27 = arith.mulf %22, %26 : vector<8x1xf32>
    %cst_20 = arith.constant dense<0.000000e+00> : vector<8xf32>
    %28 = vector.multi_reduction <add>, %25, %cst_20 [1] : vector<8x8xf32> to vector<8xf32>
    %29 = vector.shape_cast %28 : vector<8xf32> to vector<8x1xf32>
    %30 = arith.addf %27, %29 : vector<8x1xf32>
    %c0_21 = arith.constant 0 : index
    %c0_22 = arith.constant 0 : index
    %31 = vector.load %arg10[%c0_21, %c0_22] : memref<8x1xf32, #tpu.memory_space<vmem>>, vector<8x1xf32>
    tpu.vector_store %arg10[%c0_21, %c0_22], %30 {strides = array<i32>} : memref<8x1xf32, #tpu.memory_space<vmem>>, vector<8x1xf32>,
    %c0_23 = arith.constant 0 : index
    %c0_24 = arith.constant 0 : index
    %32 = vector.load %arg11[%c0_23, %c0_24] : memref<8x16xf32, #tpu.memory_space<vmem>>, vector<8x16xf32>
    %33 = vector.broadcast %22 : vector<8x1xf32> to vector<8x16xf32>
    %34 = arith.mulf %33, %32 : vector<8x16xf32>
    %35 = arith.truncf %25 : vector<8x8xf32> to vector<8x8xbf16>
    %c0_25 = arith.constant 0 : index
    %c0_26 = arith.constant 0 : index
    %c0_27 = arith.constant 0 : index
    %c0_28 = arith.constant 0 : index
    %36 = vector.load %arg6[%c0_25, %c0_26, %c0_27, %c0_28] : memref<1x1x8x16xbf16, #tpu.memory_space<vmem>>, vector<1x1x8x16xbf16>
    %37 = vector.shape_cast %36 : vector<1x1x8x16xbf16> to vector<8x16xbf16>
    %cst_29 = arith.constant dense<0.000000e+00> : vector<8x16xf32>
    %38 = tpu.matmul %35, %37, %cst_29 {dimension_numbers = #tpu.dot_dimension_numbers<[1], [0], [0], [1], [0, 0, 1, 1], [], []>} : vector<8x8xbf16>, vector<8x16xbf16>, vector<8x16xf32> -> vector<8x16xf32>
    %39 = arith.addf %34, %38 : vector<8x16xf32>
    %c0_30 = arith.constant 0 : index
    %c0_31 = arith.constant 0 : index
    %40 = vector.load %arg11[%c0_30, %c0_31] : memref<8x16xf32, #tpu.memory_space<vmem>>, vector<8x16xf32>
    tpu.vector_store %arg11[%c0_30, %c0_31], %39 {strides = array<i32>} : memref<8x16xf32, #tpu.memory_space<vmem>>, vector<8x16xf32>,
    %c0_32 = arith.constant 0 : index
    %c0_33 = arith.constant 0 : index
    %41 = vector.load %arg9[%c0_32, %c0_33] : memref<8x1xf32, #tpu.memory_space<vmem>>, vector<8x1xf32>
    tpu.vector_store %arg9[%c0_32, %c0_33], %19 {strides = array<i32>} : memref<8x1xf32, #tpu.memory_space<vmem>>, vector<8x1xf32>,
    %c0_i32_34 = arith.constant 0 : i32
    %42 = arith.cmpi eq, %arg3, %c0_i32_34 : i32
    %43 = arith.extui %42 : i1 to i32
    %c0_i32_35 = arith.constant 0 : i32
    %44 = arith.cmpi ne, %43, %c0_i32_35 : i32
    scf.if %44 {
      %c0_36 = arith.constant 0 : index
      %c0_37 = arith.constant 0 : index
      %45 = vector.load %arg11[%c0_36, %c0_37] : memref<8x16xf32, #tpu.memory_space<vmem>>, vector<8x16xf32>
      %c0_38 = arith.constant 0 : index
      %c0_39 = arith.constant 0 : index
      %46 = vector.load %arg10[%c0_38, %c0_39] : memref<8x1xf32, #tpu.memory_space<vmem>>, vector<8x1xf32>
      %47 = tpu.reciprocal %46 {approx = true} : vector<8x1xf32> -> vector<8x1xf32>
      %48 = vector.broadcast %47 : vector<8x1xf32> to vector<8x16xf32>
      %49 = arith.mulf %45, %48 : vector<8x16xf32>
      %50 = arith.truncf %49 : vector<8x16xf32> to vector<8x16xbf16>
      %c0_40 = arith.constant 0 : index
      %c0_41 = arith.constant 0 : index
      %c0_42 = arith.constant 0 : index
      %c0_43 = arith.constant 0 : index
      %51 = vector.load %arg8[%c0_40, %c0_41, %c0_42, %c0_43] : memref<1x1x8x16xbf16, #tpu.memory_space<vmem>>, vector<1x1x8x16xbf16>
      %52 = vector.shape_cast %51 : vector<1x1x8x16xbf16> to vector<8x16xbf16>
      %53 = vector.shape_cast %50 : vector<8x16xbf16> to vector<1x1x8x16xbf16>
      tpu.vector_store %arg8[%c0_40, %c0_41, %c0_42, %c0_43], %53 {strides = array<i32>} : memref<1x1x8x16xbf16, #tpu.memory_space<vmem>>, vector<1x1x8x16xbf16>,
    } else {
    }
    return
  }
  func.func @transform_0(%arg0: i32, %arg1: i32, %arg2: i32, %arg3: i32) -> (i32, i32, i32, i32) {
    %c0_i32 = arith.constant 0 : i32
    %c0_i32_0 = arith.constant 0 : i32
    return %arg0, %arg1, %arg2, %c0_i32 : i32, i32, i32, i32
  }
  func.func @transform_1(%arg0: i32, %arg1: i32, %arg2: i32, %arg3: i32) -> (i32, i32, i32, i32) {
    %c0_i32 = arith.constant 0 : i32
    %c0_i32_0 = arith.constant 0 : i32
    return %arg0, %arg1, %arg3, %c0_i32 : i32, i32, i32, i32
  }
  func.func @transform_2(%arg0: i32, %arg1: i32, %arg2: i32, %arg3: i32) -> (i32, i32, i32, i32) {
    %c0_i32 = arith.constant 0 : i32
    %c0_i32_0 = arith.constant 0 : i32
    return %arg0, %arg1, %arg3, %c0_i32 : i32, i32, i32, i32
  }
  func.func @transform_3(%arg0: i32, %arg1: i32, %arg2: i32, %arg3: i32) -> (i32, i32, i32) {
    %c0_i32 = arith.constant 0 : i32
    %c0_i32_0 = arith.constant 0 : i32
    return %arg0, %c0_i32, %arg3 : i32, i32, i32
  }
  func.func @transform_4(%arg0: i32, %arg1: i32, %arg2: i32, %arg3: i32) -> (i32, i32, i32, i32) {
    %c0_i32 = arith.constant 0 : i32
    %c0_i32_0 = arith.constant 0 : i32
    return %arg0, %arg1, %arg2, %c0_i32 : i32, i32, i32, i32
  }
}

module attributes {stable_mosaic.version = 11 : i64} {
  func.func @_dense_res_ln_kernel(%arg0: i32, %arg1: i32, %arg2: memref<16x32xbf16, #tpu.memory_space<vmem>>, %arg3: memref<32x32xbf16, #tpu.memory_space<vmem>>, %arg4: memref<1x32xf32, #tpu.memory_space<vmem>>, %arg5: memref<16x32xbf16, #tpu.memory_space<vmem>>, %arg6: memref<1x32xf32, #tpu.memory_space<vmem>>, %arg7: memref<1x32xf32, #tpu.memory_space<vmem>>, %arg8: memref<16x32xbf16, #tpu.memory_space<vmem>>, %arg9: memref<16x32xf32, #tpu.memory_space<vmem>>) attributes {dimension_semantics = [#tpu.dimension_semantics<parallel>, #tpu.dimension_semantics<arbitrary>], iteration_bounds = array<i64: 1, 1>, scalar_prefetch = 0 : i64, scratch_operands = 1 : i64, tpu.core_type = #tpu.core_type<tc>, window_params = [{transform_indices = @transform_0, window_bounds = array<i64: 16, 32>}, {transform_indices = @transform_1, window_bounds = array<i64: 32, 32>}, {pipeline_mode = #tpu.pipeline_mode<synchronous>, transform_indices = @transform_2, window_bounds = array<i64: 1, 32>}, {transform_indices = @transform_3, window_bounds = array<i64: 16, 32>}, {pipeline_mode = #tpu.pipeline_mode<synchronous>, transform_indices = @transform_4, window_bounds = array<i64: 1, 32>}, {pipeline_mode = #tpu.pipeline_mode<synchronous>, transform_indices = @transform_5, window_bounds = array<i64: 1, 32>}, {transform_indices = @transform_6, window_bounds = array<i64: 16, 32>}]} {
    %c0_i32 = arith.constant 0 : i32
    %0 = arith.cmpi eq, %arg1, %c0_i32 : i32
    %1 = arith.extui %0 : i1 to i32
    %c0_i32_0 = arith.constant 0 : i32
    %2 = arith.cmpi ne, %1, %c0_i32_0 : i32
    scf.if %2 {
      %cst_10 = arith.constant 0.000000e+00 : f32
      %12 = vector.broadcast %cst_10 : f32 to vector<16x32xf32>
      %c0_11 = arith.constant 0 : index
      %c0_12 = arith.constant 0 : index
      %13 = vector.load %arg9[%c0_11, %c0_12] : memref<16x32xf32, #tpu.memory_space<vmem>>, vector<16x32xf32>
      tpu.vector_store %arg9[%c0_11, %c0_12], %12 {strides = array<i32>} : memref<16x32xf32, #tpu.memory_space<vmem>>, vector<16x32xf32>,
    } else {
    }
    %c0 = arith.constant 0 : index
    %c0_1 = arith.constant 0 : index
    %3 = vector.load %arg9[%c0, %c0_1] : memref<16x32xf32, #tpu.memory_space<vmem>>, vector<16x32xf32>
    %c0_2 = arith.constant 0 : index
    %c0_3 = arith.constant 0 : index
    %4 = vector.load %arg2[%c0_2, %c0_3] : memref<16x32xbf16, #tpu.memory_space<vmem>>, vector<16x32xbf16>
    %c0_4 = arith.constant 0 : index
    %c0_5 = arith.constant 0 : index
    %5 = vector.load %arg3[%c0_4, %c0_5] : memref<32x32xbf16, #tpu.memory_space<vmem>>, vector<32x32xbf16>
    %cst = arith.constant dense<0.000000e+00> : vector<16x32xf32>
    %6 = tpu.matmul %4, %5, %cst {dimension_numbers = #tpu.dot_dimension_numbers<[1], [0], [0], [1], [0, 0, 1, 1], [], []>} : vector<16x32xbf16>, vector<32x32xbf16>, vector<16x32xf32> -> vector<16x32xf32>
    %7 = arith.addf %3, %6 : vector<16x32xf32>
    %c0_6 = arith.constant 0 : index
    %c0_7 = arith.constant 0 : index
    %8 = vector.load %arg9[%c0_6, %c0_7] : memref<16x32xf32, #tpu.memory_space<vmem>>, vector<16x32xf32>
    tpu.vector_store %arg9[%c0_6, %c0_7], %7 {strides = array<i32>} : memref<16x32xf32, #tpu.memory_space<vmem>>, vector<16x32xf32>,
    %c0_i32_8 = arith.constant 0 : i32
    %9 = arith.cmpi eq, %arg1, %c0_i32_8 : i32
    %10 = arith.extui %9 : i1 to i32
    %c0_i32_9 = arith.constant 0 : i32
    %11 = arith.cmpi ne, %10, %c0_i32_9 : i32
    scf.if %11 {
      %c0_10 = arith.constant 0 : index
      %c0_11 = arith.constant 0 : index
      %12 = vector.load %arg9[%c0_10, %c0_11] : memref<16x32xf32, #tpu.memory_space<vmem>>, vector<16x32xf32>
      %c0_12 = arith.constant 0 : index
      %c0_13 = arith.constant 0 : index
      %13 = vector.load %arg4[%c0_12, %c0_13] : memref<1x32xf32, #tpu.memory_space<vmem>>, vector<1x32xf32>
      %14 = vector.broadcast %13 : vector<1x32xf32> to vector<16x32xf32>
      %15 = arith.addf %12, %14 : vector<16x32xf32>
      %c0_14 = arith.constant 0 : index
      %c0_15 = arith.constant 0 : index
      %16 = vector.load %arg5[%c0_14, %c0_15] : memref<16x32xbf16, #tpu.memory_space<vmem>>, vector<16x32xbf16>
      %17 = arith.extf %16 : vector<16x32xbf16> to vector<16x32xf32>
      %18 = arith.addf %15, %17 : vector<16x32xf32>
      %cst_16 = arith.constant dense<0.000000e+00> : vector<16xf32>
      %19 = vector.multi_reduction <add>, %18, %cst_16 [1] : vector<16x32xf32> to vector<16xf32>
      %20 = vector.shape_cast %19 : vector<16xf32> to vector<16x1xf32>
      %cst_17 = arith.constant 3.200000e+01 : f32
      %21 = vector.broadcast %cst_17 : f32 to vector<16x1xf32>
      %22 = arith.divf %20, %21 : vector<16x1xf32>
      %23 = vector.broadcast %22 : vector<16x1xf32> to vector<16x32xf32>
      %24 = arith.subf %18, %23 : vector<16x32xf32>
      %25 = arith.mulf %24, %24 : vector<16x32xf32>
      %cst_18 = arith.constant dense<0.000000e+00> : vector<16xf32>
      %26 = vector.multi_reduction <add>, %25, %cst_18 [1] : vector<16x32xf32> to vector<16xf32>
      %27 = vector.shape_cast %26 : vector<16xf32> to vector<16x1xf32>
      %cst_19 = arith.constant 3.200000e+01 : f32
      %28 = vector.broadcast %cst_19 : f32 to vector<16x1xf32>
      %29 = arith.divf %27, %28 : vector<16x1xf32>
      %30 = vector.broadcast %22 : vector<16x1xf32> to vector<16x32xf32>
      %31 = arith.subf %18, %30 : vector<16x32xf32>
      %cst_20 = arith.constant 9.99999974E-6 : f32
      %32 = vector.broadcast %cst_20 : f32 to vector<16x1xf32>
      %33 = arith.addf %29, %32 : vector<16x1xf32>
      %34 = math.rsqrt %33 : vector<16x1xf32>
      %35 = vector.broadcast %34 : vector<16x1xf32> to vector<16x32xf32>
      %36 = arith.mulf %31, %35 : vector<16x32xf32>
      %c0_21 = arith.constant 0 : index
      %c0_22 = arith.constant 0 : index
      %37 = vector.load %arg6[%c0_21, %c0_22] : memref<1x32xf32, #tpu.memory_space<vmem>>, vector<1x32xf32>
      %38 = vector.broadcast %37 : vector<1x32xf32> to vector<16x32xf32>
      %39 = arith.mulf %36, %38 : vector<16x32xf32>
      %c0_23 = arith.constant 0 : index
      %c0_24 = arith.constant 0 : index
      %40 = vector.load %arg7[%c0_23, %c0_24] : memref<1x32xf32, #tpu.memory_space<vmem>>, vector<1x32xf32>
      %41 = vector.broadcast %40 : vector<1x32xf32> to vector<16x32xf32>
      %42 = arith.addf %39, %41 : vector<16x32xf32>
      %43 = arith.truncf %42 : vector<16x32xf32> to vector<16x32xbf16>
      %c0_25 = arith.constant 0 : index
      %c0_26 = arith.constant 0 : index
      %44 = vector.load %arg8[%c0_25, %c0_26] : memref<16x32xbf16, #tpu.memory_space<vmem>>, vector<16x32xbf16>
      tpu.vector_store %arg8[%c0_25, %c0_26], %43 {strides = array<i32>} : memref<16x32xbf16, #tpu.memory_space<vmem>>, vector<16x32xbf16>,
    } else {
    }
    return
  }
  func.func @transform_0(%arg0: i32, %arg1: i32) -> (i32, i32) {
    %c0_i32 = arith.constant 0 : i32
    return %arg0, %arg1 : i32, i32
  }
  func.func @transform_1(%arg0: i32, %arg1: i32) -> (i32, i32) {
    %c0_i32 = arith.constant 0 : i32
    %c0_i32_0 = arith.constant 0 : i32
    return %arg1, %c0_i32 : i32, i32
  }
  func.func @transform_2(%arg0: i32, %arg1: i32) -> (i32, i32) {
    %c0_i32 = arith.constant 0 : i32
    %c0_i32_0 = arith.constant 0 : i32
    %c0_i32_1 = arith.constant 0 : i32
    return %c0_i32, %c0_i32_0 : i32, i32
  }
  func.func @transform_3(%arg0: i32, %arg1: i32) -> (i32, i32) {
    %c0_i32 = arith.constant 0 : i32
    %c0_i32_0 = arith.constant 0 : i32
    return %arg0, %c0_i32 : i32, i32
  }
  func.func @transform_4(%arg0: i32, %arg1: i32) -> (i32, i32) {
    %c0_i32 = arith.constant 0 : i32
    %c0_i32_0 = arith.constant 0 : i32
    %c0_i32_1 = arith.constant 0 : i32
    return %c0_i32, %c0_i32_0 : i32, i32
  }
  func.func @transform_5(%arg0: i32, %arg1: i32) -> (i32, i32) {
    %c0_i32 = arith.constant 0 : i32
    %c0_i32_0 = arith.constant 0 : i32
    %c0_i32_1 = arith.constant 0 : i32
    return %c0_i32, %c0_i32_0 : i32, i32
  }
  func.func @transform_6(%arg0: i32, %arg1: i32) -> (i32, i32) {
    %c0_i32 = arith.constant 0 : i32
    %c0_i32_0 = arith.constant 0 : i32
    return %arg0, %c0_i32 : i32, i32
  }
}

module attributes {stable_mosaic.version = 11 : i64} {
  func.func @_dense_kernel_noacc(%arg0: i32, %arg1: i32, %arg2: memref<16x32xbf16, #tpu.memory_space<vmem>>, %arg3: memref<32x128xbf16, #tpu.memory_space<vmem>>, %arg4: memref<1x128xf32, #tpu.memory_space<vmem>>, %arg5: memref<16x128xf32, #tpu.memory_space<vmem>>) attributes {dimension_semantics = [#tpu.dimension_semantics<parallel>, #tpu.dimension_semantics<parallel>], iteration_bounds = array<i64: 1, 1>, scalar_prefetch = 0 : i64, scratch_operands = 0 : i64, tpu.core_type = #tpu.core_type<tc>, window_params = [{transform_indices = @transform_0, window_bounds = array<i64: 16, 32>}, {transform_indices = @transform_1, window_bounds = array<i64: 32, 128>}, {transform_indices = @transform_2, window_bounds = array<i64: 1, 128>}, {transform_indices = @transform_3, window_bounds = array<i64: 16, 128>}]} {
    %c0 = arith.constant 0 : index
    %c0_0 = arith.constant 0 : index
    %0 = vector.load %arg2[%c0, %c0_0] : memref<16x32xbf16, #tpu.memory_space<vmem>>, vector<16x32xbf16>
    %c0_1 = arith.constant 0 : index
    %c0_2 = arith.constant 0 : index
    %1 = vector.load %arg3[%c0_1, %c0_2] : memref<32x128xbf16, #tpu.memory_space<vmem>>, vector<32x128xbf16>
    %cst = arith.constant dense<0.000000e+00> : vector<16x128xf32>
    %2 = tpu.matmul %0, %1, %cst {dimension_numbers = #tpu.dot_dimension_numbers<[1], [0], [0], [1], [0, 0, 1, 1], [], []>} : vector<16x32xbf16>, vector<32x128xbf16>, vector<16x128xf32> -> vector<16x128xf32>
    %c0_3 = arith.constant 0 : index
    %c0_4 = arith.constant 0 : index
    %3 = vector.load %arg4[%c0_3, %c0_4] : memref<1x128xf32, #tpu.memory_space<vmem>>, vector<1x128xf32>
    %4 = vector.broadcast %3 : vector<1x128xf32> to vector<16x128xf32>
    %5 = arith.addf %2, %4 : vector<16x128xf32>
    %c0_5 = arith.constant 0 : index
    %c0_6 = arith.constant 0 : index
    %6 = vector.load %arg5[%c0_5, %c0_6] : memref<16x128xf32, #tpu.memory_space<vmem>>, vector<16x128xf32>
    tpu.vector_store %arg5[%c0_5, %c0_6], %5 {strides = array<i32>} : memref<16x128xf32, #tpu.memory_space<vmem>>, vector<16x128xf32>,
    return
  }
  func.func @transform_0(%arg0: i32, %arg1: i32) -> (i32, i32) {
    %c0_i32 = arith.constant 0 : i32
    %c0_i32_0 = arith.constant 0 : i32
    return %arg0, %c0_i32 : i32, i32
  }
  func.func @transform_1(%arg0: i32, %arg1: i32) -> (i32, i32) {
    %c0_i32 = arith.constant 0 : i32
    %c0_i32_0 = arith.constant 0 : i32
    return %c0_i32, %arg1 : i32, i32
  }
  func.func @transform_2(%arg0: i32, %arg1: i32) -> (i32, i32) {
    %c0_i32 = arith.constant 0 : i32
    %c0_i32_0 = arith.constant 0 : i32
    return %c0_i32, %arg1 : i32, i32
  }
  func.func @transform_3(%arg0: i32, %arg1: i32) -> (i32, i32) {
    %c0_i32 = arith.constant 0 : i32
    return %arg0, %arg1 : i32, i32
  }
}

module attributes {stable_mosaic.version = 11 : i64} {
  func.func @_ffn_kernel(%arg0: i32, %arg1: i32, %arg2: memref<16x32xbf16, #tpu.memory_space<vmem>>, %arg3: memref<32x64xbf16, #tpu.memory_space<vmem>>, %arg4: memref<1x64xf32, #tpu.memory_space<vmem>>, %arg5: memref<64x32xbf16, #tpu.memory_space<vmem>>, %arg6: memref<1x32xf32, #tpu.memory_space<vmem>>, %arg7: memref<1x32xf32, #tpu.memory_space<vmem>>, %arg8: memref<1x32xf32, #tpu.memory_space<vmem>>, %arg9: memref<16x32xbf16, #tpu.memory_space<vmem>>, %arg10: memref<16x32xf32, #tpu.memory_space<vmem>>) attributes {dimension_semantics = [#tpu.dimension_semantics<parallel>, #tpu.dimension_semantics<arbitrary>], iteration_bounds = array<i64: 1, 1>, scalar_prefetch = 0 : i64, scratch_operands = 1 : i64, tpu.core_type = #tpu.core_type<tc>, window_params = [{transform_indices = @transform_0, window_bounds = array<i64: 16, 32>}, {transform_indices = @transform_1, window_bounds = array<i64: 32, 64>}, {transform_indices = @transform_2, window_bounds = array<i64: 1, 64>}, {transform_indices = @transform_3, window_bounds = array<i64: 64, 32>}, {pipeline_mode = #tpu.pipeline_mode<synchronous>, transform_indices = @transform_4, window_bounds = array<i64: 1, 32>}, {pipeline_mode = #tpu.pipeline_mode<synchronous>, transform_indices = @transform_5, window_bounds = array<i64: 1, 32>}, {pipeline_mode = #tpu.pipeline_mode<synchronous>, transform_indices = @transform_6, window_bounds = array<i64: 1, 32>}, {transform_indices = @transform_7, window_bounds = array<i64: 16, 32>}]} {
    %c0_i32 = arith.constant 0 : i32
    %0 = arith.cmpi eq, %arg1, %c0_i32 : i32
    %1 = arith.extui %0 : i1 to i32
    %c0_i32_0 = arith.constant 0 : i32
    %2 = arith.cmpi ne, %1, %c0_i32_0 : i32
    scf.if %2 {
      %cst_19 = arith.constant 0.000000e+00 : f32
      %31 = vector.broadcast %cst_19 : f32 to vector<16x32xf32>
      %c0_20 = arith.constant 0 : index
      %c0_21 = arith.constant 0 : index
      %32 = vector.load %arg10[%c0_20, %c0_21] : memref<16x32xf32, #tpu.memory_space<vmem>>, vector<16x32xf32>
      tpu.vector_store %arg10[%c0_20, %c0_21], %31 {strides = array<i32>} : memref<16x32xf32, #tpu.memory_space<vmem>>, vector<16x32xf32>,
    } else {
    }
    %c0 = arith.constant 0 : index
    %c0_1 = arith.constant 0 : index
    %3 = vector.load %arg2[%c0, %c0_1] : memref<16x32xbf16, #tpu.memory_space<vmem>>, vector<16x32xbf16>
    %c0_2 = arith.constant 0 : index
    %c0_3 = arith.constant 0 : index
    %4 = vector.load %arg3[%c0_2, %c0_3] : memref<32x64xbf16, #tpu.memory_space<vmem>>, vector<32x64xbf16>
    %cst = arith.constant dense<0.000000e+00> : vector<16x64xf32>
    %5 = tpu.matmul %3, %4, %cst {dimension_numbers = #tpu.dot_dimension_numbers<[1], [0], [0], [1], [0, 0, 1, 1], [], []>} : vector<16x32xbf16>, vector<32x64xbf16>, vector<16x64xf32> -> vector<16x64xf32>
    %c0_4 = arith.constant 0 : index
    %c0_5 = arith.constant 0 : index
    %6 = vector.load %arg4[%c0_4, %c0_5] : memref<1x64xf32, #tpu.memory_space<vmem>>, vector<1x64xf32>
    %7 = vector.broadcast %6 : vector<1x64xf32> to vector<16x64xf32>
    %8 = arith.addf %5, %7 : vector<16x64xf32>
    %9 = arith.truncf %8 : vector<16x64xf32> to vector<16x64xbf16>
    %cst_6 = arith.constant 5.000000e-01 : bf16
    %10 = vector.broadcast %cst_6 : bf16 to vector<16x64xbf16>
    %11 = arith.mulf %10, %9 : vector<16x64xbf16>
    %cst_7 = arith.constant 4.467770e-02 : bf16
    %12 = vector.broadcast %cst_7 : bf16 to vector<16x64xbf16>
    %13 = arith.mulf %12, %9 : vector<16x64xbf16>
    %14 = arith.mulf %13, %9 : vector<16x64xbf16>
    %15 = arith.mulf %14, %9 : vector<16x64xbf16>
    %16 = arith.addf %9, %15 : vector<16x64xbf16>
    %cst_8 = arith.constant 7.968750e-01 : bf16
    %17 = vector.broadcast %cst_8 : bf16 to vector<16x64xbf16>
    %18 = arith.mulf %17, %16 : vector<16x64xbf16>
    %19 = math.tanh %18 : vector<16x64xbf16>
    %cst_9 = arith.constant 1.000000e+00 : bf16
    %20 = vector.broadcast %cst_9 : bf16 to vector<16x64xbf16>
    %21 = arith.addf %20, %19 : vector<16x64xbf16>
    %22 = arith.mulf %11, %21 : vector<16x64xbf16>
    %c0_10 = arith.constant 0 : index
    %c0_11 = arith.constant 0 : index
    %23 = vector.load %arg10[%c0_10, %c0_11] : memref<16x32xf32, #tpu.memory_space<vmem>>, vector<16x32xf32>
    %c0_12 = arith.constant 0 : index
    %c0_13 = arith.constant 0 : index
    %24 = vector.load %arg5[%c0_12, %c0_13] : memref<64x32xbf16, #tpu.memory_space<vmem>>, vector<64x32xbf16>
    %cst_14 = arith.constant dense<0.000000e+00> : vector<16x32xf32>
    %25 = tpu.matmul %22, %24, %cst_14 {dimension_numbers = #tpu.dot_dimension_numbers<[1], [0], [0], [1], [0, 0, 1, 1], [], []>} : vector<16x64xbf16>, vector<64x32xbf16>, vector<16x32xf32> -> vector<16x32xf32>
    %26 = arith.addf %23, %25 : vector<16x32xf32>
    %c0_15 = arith.constant 0 : index
    %c0_16 = arith.constant 0 : index
    %27 = vector.load %arg10[%c0_15, %c0_16] : memref<16x32xf32, #tpu.memory_space<vmem>>, vector<16x32xf32>
    tpu.vector_store %arg10[%c0_15, %c0_16], %26 {strides = array<i32>} : memref<16x32xf32, #tpu.memory_space<vmem>>, vector<16x32xf32>,
    %c0_i32_17 = arith.constant 0 : i32
    %28 = arith.cmpi eq, %arg1, %c0_i32_17 : i32
    %29 = arith.extui %28 : i1 to i32
    %c0_i32_18 = arith.constant 0 : i32
    %30 = arith.cmpi ne, %29, %c0_i32_18 : i32
    scf.if %30 {
      %c0_19 = arith.constant 0 : index
      %c0_20 = arith.constant 0 : index
      %31 = vector.load %arg10[%c0_19, %c0_20] : memref<16x32xf32, #tpu.memory_space<vmem>>, vector<16x32xf32>
      %c0_21 = arith.constant 0 : index
      %c0_22 = arith.constant 0 : index
      %32 = vector.load %arg6[%c0_21, %c0_22] : memref<1x32xf32, #tpu.memory_space<vmem>>, vector<1x32xf32>
      %33 = vector.broadcast %32 : vector<1x32xf32> to vector<16x32xf32>
      %34 = arith.addf %31, %33 : vector<16x32xf32>
      %c0_23 = arith.constant 0 : index
      %c0_24 = arith.constant 0 : index
      %35 = vector.load %arg2[%c0_23, %c0_24] : memref<16x32xbf16, #tpu.memory_space<vmem>>, vector<16x32xbf16>
      %36 = arith.extf %35 : vector<16x32xbf16> to vector<16x32xf32>
      %37 = arith.addf %34, %36 : vector<16x32xf32>
      %cst_25 = arith.constant dense<0.000000e+00> : vector<16xf32>
      %38 = vector.multi_reduction <add>, %37, %cst_25 [1] : vector<16x32xf32> to vector<16xf32>
      %39 = vector.shape_cast %38 : vector<16xf32> to vector<16x1xf32>
      %cst_26 = arith.constant 3.200000e+01 : f32
      %40 = vector.broadcast %cst_26 : f32 to vector<16x1xf32>
      %41 = arith.divf %39, %40 : vector<16x1xf32>
      %42 = vector.broadcast %41 : vector<16x1xf32> to vector<16x32xf32>
      %43 = arith.subf %37, %42 : vector<16x32xf32>
      %44 = arith.mulf %43, %43 : vector<16x32xf32>
      %cst_27 = arith.constant dense<0.000000e+00> : vector<16xf32>
      %45 = vector.multi_reduction <add>, %44, %cst_27 [1] : vector<16x32xf32> to vector<16xf32>
      %46 = vector.shape_cast %45 : vector<16xf32> to vector<16x1xf32>
      %cst_28 = arith.constant 3.200000e+01 : f32
      %47 = vector.broadcast %cst_28 : f32 to vector<16x1xf32>
      %48 = arith.divf %46, %47 : vector<16x1xf32>
      %49 = vector.broadcast %41 : vector<16x1xf32> to vector<16x32xf32>
      %50 = arith.subf %37, %49 : vector<16x32xf32>
      %cst_29 = arith.constant 9.99999974E-6 : f32
      %51 = vector.broadcast %cst_29 : f32 to vector<16x1xf32>
      %52 = arith.addf %48, %51 : vector<16x1xf32>
      %53 = math.rsqrt %52 : vector<16x1xf32>
      %54 = vector.broadcast %53 : vector<16x1xf32> to vector<16x32xf32>
      %55 = arith.mulf %50, %54 : vector<16x32xf32>
      %c0_30 = arith.constant 0 : index
      %c0_31 = arith.constant 0 : index
      %56 = vector.load %arg7[%c0_30, %c0_31] : memref<1x32xf32, #tpu.memory_space<vmem>>, vector<1x32xf32>
      %57 = vector.broadcast %56 : vector<1x32xf32> to vector<16x32xf32>
      %58 = arith.mulf %55, %57 : vector<16x32xf32>
      %c0_32 = arith.constant 0 : index
      %c0_33 = arith.constant 0 : index
      %59 = vector.load %arg8[%c0_32, %c0_33] : memref<1x32xf32, #tpu.memory_space<vmem>>, vector<1x32xf32>
      %60 = vector.broadcast %59 : vector<1x32xf32> to vector<16x32xf32>
      %61 = arith.addf %58, %60 : vector<16x32xf32>
      %62 = arith.truncf %61 : vector<16x32xf32> to vector<16x32xbf16>
      %c0_34 = arith.constant 0 : index
      %c0_35 = arith.constant 0 : index
      %63 = vector.load %arg9[%c0_34, %c0_35] : memref<16x32xbf16, #tpu.memory_space<vmem>>, vector<16x32xbf16>
      tpu.vector_store %arg9[%c0_34, %c0_35], %62 {strides = array<i32>} : memref<16x32xbf16, #tpu.memory_space<vmem>>, vector<16x32xbf16>,
    } else {
    }
    return
  }
  func.func @transform_0(%arg0: i32, %arg1: i32) -> (i32, i32) {
    %c0_i32 = arith.constant 0 : i32
    %c0_i32_0 = arith.constant 0 : i32
    return %arg0, %c0_i32 : i32, i32
  }
  func.func @transform_1(%arg0: i32, %arg1: i32) -> (i32, i32) {
    %c0_i32 = arith.constant 0 : i32
    %c0_i32_0 = arith.constant 0 : i32
    return %c0_i32, %arg1 : i32, i32
  }
  func.func @transform_2(%arg0: i32, %arg1: i32) -> (i32, i32) {
    %c0_i32 = arith.constant 0 : i32
    %c0_i32_0 = arith.constant 0 : i32
    return %c0_i32, %arg1 : i32, i32
  }
  func.func @transform_3(%arg0: i32, %arg1: i32) -> (i32, i32) {
    %c0_i32 = arith.constant 0 : i32
    %c0_i32_0 = arith.constant 0 : i32
    return %arg1, %c0_i32 : i32, i32
  }
  func.func @transform_4(%arg0: i32, %arg1: i32) -> (i32, i32) {
    %c0_i32 = arith.constant 0 : i32
    %c0_i32_0 = arith.constant 0 : i32
    %c0_i32_1 = arith.constant 0 : i32
    return %c0_i32, %c0_i32_0 : i32, i32
  }
  func.func @transform_5(%arg0: i32, %arg1: i32) -> (i32, i32) {
    %c0_i32 = arith.constant 0 : i32
    %c0_i32_0 = arith.constant 0 : i32
    %c0_i32_1 = arith.constant 0 : i32
    return %c0_i32, %c0_i32_0 : i32, i32
  }
  func.func @transform_6(%arg0: i32, %arg1: i32) -> (i32, i32) {
    %c0_i32 = arith.constant 0 : i32
    %c0_i32_0 = arith.constant 0 : i32
    %c0_i32_1 = arith.constant 0 : i32
    return %c0_i32, %c0_i32_0 : i32, i32
  }
  func.func @transform_7(%arg0: i32, %arg1: i32) -> (i32, i32) {
    %c0_i32 = arith.constant 0 : i32
    %c0_i32_0 = arith.constant 0 : i32
    return %arg0, %c0_i32 : i32, i32
  }
}

</mosaic_0001>

<bundles_post_ra>
// kernel: ner_transformer_forward.11
= control target key start
LH: loop header
LB: loop body
LE: loop exit
PB: predicated region body
PF: predicated region fallthrough
CT: control target
= control target key end

     0   :  { %v130_v0 = vmov 0.0   ;;  %vm131_vm0 = vmmov 0   ;;  %vm45_vm1 = vcmask 261120   ;;  %vm98_vm2 = vcmask 781312   ;;  %s170_s1 = inlined_call_operand.vmem [shape: bf16[32,96], index: 1, kind: input, shape index: {}]   ;;  %s171_s0 = inlined_call_operand.vmem [shape: bf16[16,32], index: 0, kind: input, shape index: {}]   ;;  %s172_s2 = inlined_call_operand.vmem [shape: f32[1,96], index: 2, kind: input, shape index: {}]   ;;  %s173_s3 = inlined_call_operand.vmem [shape: bf16[16,96], index: 3, kind: output, shape index: {}]  }
   0x1   :  { %117 = vmatprep.subr.bf16.mxu0 %v130_v0  ;;  %v127_v1 = vld [vmem:[%s170_s1] sm:$0xff]   ;;  %121 = vmatprep.mubr.msk.bf16.mxu0 %vm131_vm0, %v130_v0  ;;  %v128_v2 = vld [vmem:[%s170_s1 + $0x8] sm:$0xff]  }
   0x2   :  { %118 = vmatpush3.bf16.msra.mxu0 %v127_v1  ;;  %v129_v3 = vld [vmem:[%s171_s0] sm:$0xff]  }
   0x3   :  { %119 = vmatprep.subr.bf16.mxu0 %v130_v0  ;;  %v105_v4 = vld [vmem:[%s172_s2] ss:$0 sm:$0xff] }
   0x6   :  { %120 = vmatpush3.bf16.msra.mxu0 %v128_v2 }
   0x9   :  { %122 = vmatmul.mubr.msk.bf16.vlgmr.msra.gmra.mrb[0].mxu0 %vm45_vm1, %v129_v3 }
  0xdc   :  { %v83_v5 = vpop.f32.mrb[0].mxu0 }
  0xdd   :  { %v84_v6 = vadd.f32 %v105_v4, %v83_v5  ;;  %v123_v7 = vpop.f32.mrb[1].mxu0 }
  0xde   :  { %v86_v8 = vpop.f32.mrb[2].mxu0 }
  0xdf   :  { %v112_v9 = vpack.c.bf16 %v84_v6, %v84_v6  ;;  %v87_v10 = vadd.f32 %v105_v4, %v86_v8  ;;  %v124_v11 = vpop.f32.mrb[3].mxu0 }
  0xe1   :  { %99 = vst.msk [vmem:[%s173_s3] sm:$0xf] %vm98_vm2, %v112_v9  ;;  %v113_v12 = vpack.c.bf16 %v87_v10, %v87_v10 }
  0xe3   :  { %100 = vst.msk [vmem:[%s173_s3 + $0x4] sm:$0xf] %vm98_vm2, %v113_v12 }

// kernel: ner_transformer_forward.10
= control target key start
LH: loop header
LB: loop body
LE: loop exit
PB: predicated region body
PF: predicated region fallthrough
CT: control target
= control target key end

     0   :  { %vm18_vm0 = vcmask 261120   ;;  %vm72_vm1 = vcmask 257024   ;;  %s132_s0 = inlined_call_operand.vmem [shape: bf16[16,32], index: 0, kind: input, shape index: {}]   ;;  %s133_s1 = inlined_call_operand.vmem [shape: f32[1,32], index: 1, kind: input, shape index: {}]   ;;  %s134_s2 = inlined_call_operand.vmem [shape: f32[1,32], index: 2, kind: input, shape index: {}]   ;;  %s135_s3 = inlined_call_operand.vmem [shape: bf16[16,32], index: 3, kind: output, shape index: {}]  }
   0x1   :  { %v86_v0 = vld [vmem:[%s132_s0] sm:$0xff]  }
   0x2   :  { %v87_v1 = vunpack.c.l.bf16 %v86_v0  ;;  %v88_v2 = vunpack.c.h.bf16 %v86_v0  ;;  %v79_v22 = vld [vmem:[%s133_s1] ss:$0 sm:$0xff] }
   0x3   :  { %v80_v24 = vld [vmem:[%s134_s2] ss:$0 sm:$0xff] }
   0x4   :  { %v19_v3 = vsel %vm18_vm0, %v87_v1, 0.0  ;;  %v22_v4 = vsel %vm18_vm0, %v88_v2, 0.0 }
   0x5   :  { %20 = vadd.xlane.f32.xlu0 %v19_v3 }
   0x9   :  { %23 = vadd.xlane.f32.xlu0 %v22_v4 }
  0x92   :  { %v21_v5 = vpop.xlane.xlu0 %20 }
  0x93   :  { %v26_v6 = vmul.f32 0.03125, %v21_v5 }
  0x95   :  { %v28_v7 = vsub.f32 %v87_v1, %v26_v6 }
  0x96   :  { %v24_v8 = vpop.xlane.xlu0 %23 }
  0x97   :  { %v27_v9 = vmul.f32 0.03125, %v24_v8  ;;  %v30_v10 = vmul.f32 %v28_v7, %v28_v7 }
  0x99   :  { %v29_v11 = vsub.f32 %v88_v2, %v27_v9  ;;  %v32_v12 = vsel %vm18_vm0, %v30_v10, 0.0 }
  0x9a   :  { %33 = vadd.xlane.f32.xlu1 %v32_v12 }
  0x9b   :  { %v31_v13 = vmul.f32 %v29_v11, %v29_v11 }
  0x9d   :  { %v35_v14 = vsel %vm18_vm0, %v31_v13, 0.0 }
  0x9e   :  { %36 = vadd.xlane.f32.xlu1 %v35_v14 }
 0x127   :  { %v34_v15 = vpop.xlane.xlu1 %33 }
 0x128   :  { %v38_v16 = vmul.f32 0.03125, %v34_v15 }
 0x12a   :  { %v40_v17 = vadd.f32 1e-05, %v38_v16 }
 0x12b   :  { %v37_v18 = vpop.xlane.xlu1 %36 }
 0x12c   :  { %89 = vrsqrt.f32 %v40_v17  ;;  %v39_v19 = vmul.f32 0.03125, %v37_v18 }
 0x12e   :  { %v41_v20 = vadd.f32 1e-05, %v39_v19 }
 0x130   :  { %91 = vrsqrt.f32 %v41_v20 }
 0x136   :  { %v90_v21 = vpop.eup %89 }
 0x137   :  { %v44_v23 = vmul.f32 %v90_v21, %v28_v7 }
 0x139   :  { %v53_v25 = vmul.f32 %v79_v22, %v44_v23 }
 0x13a   :  { %v92_v26 = vpop.eup %91 }
 0x13b   :  { %v62_v27 = vadd.f32 %v80_v24, %v53_v25  ;;  %v45_v28 = vmul.f32 %v92_v26, %v29_v11 }
 0x13d   :  { %v83_v29 = vpack.c.bf16 %v62_v27, %v62_v27  ;;  %v54_v30 = vmul.f32 %v79_v22, %v45_v28 }
 0x13f   :  { %73 = vst.msk [vmem:[%s135_s3] sm:$0xf] %vm72_vm1, %v83_v29  ;;  %v63_v31 = vadd.f32 %v80_v24, %v54_v30 }
 0x141   :  { %v84_v32 = vpack.c.bf16 %v63_v31, %v63_v31 }
 0x143   :  { %74 = vst.msk [vmem:[%s135_s3 + $0x4] sm:$0xf] %vm72_vm1, %v84_v32 }

// kernel: ner_transformer_forward.12
= control target key start
LH: loop header
LB: loop body
LE: loop exit
PB: predicated region body
PF: predicated region fallthrough
CT: control target
= control target key end

     0   :  { %s852_s15 = smov 0   ;;  %s854_s16 = smov 0   ;;  %s929_s0 = inlined_call_operand.vmem [shape: bf16[2,2,8,16], index: 0, kind: input, shape index: {}]   ;;  %s930_s1 = inlined_call_operand.vmem [shape: bf16[2,2,8,16], index: 1, kind: input, shape index: {}]   ;;  %s931_s2 = inlined_call_operand.vmem [shape: bf16[2,2,8,16], index: 2, kind: input, shape index: {}]   ;;  %s932_s3 = inlined_call_operand.vmem [shape: f32[2,1,8], index: 3, kind: input, shape index: {}]   ;;  %s933_s4 = inlined_call_operand.vmem [shape: bf16[2,2,8,16], index: 4, kind: output, shape index: {}]  }
   0x1   :  { %s856_s17 = smov 0   ;;  %s858_s18 = smov 0  }
   0x2   :  { %s860_s19 = smov 0  }
   0x3 LB: > { %s36_s20 = sadd.s32 1, %s813_s17  ;;  %s40_s21 = sadd.s32 1, %s817_s18  ;;  %s821_s19 = sphi %s860_s19, %s14_s19   ;;  %s817_s18 = sphi %s858_s18, %s937_s18   ;;  %s813_s17 = sphi %s856_s17, %s936_s17   ;;  %s809_s16 = sphi %s854_s16, %s935_s16   ;;  %s805_s15 = sphi %s852_s15, %s934_s15  }
   0x4   : > { %p38_p0 = scmp.ge.s32.totalorder %s36_s20, 2  ;;  %p701_p1 = scmp.ge.s32.totalorder %s821_s19, 1 }
   0x5   : > { %p255_p2 = scmp.lt.s32.totalorder %s821_s19, 5 }
   0x6   : > { %s939_s20 = smov (%p38_p0, %s36_s20), 0  ;;  %s941_s21 = smov (!%p38_p0, %s40_s21), %s817_s18 }
   0x7   : > { %p256_p3 = pnand %p701_p1, %p255_p2  ;;  %p42_p4 = scmp.ge.s32.totalorder %s941_s21, 2 }
   0x8   : > { %p321_p5 = scmp.lt.s32.totalorder (!%p256_p3), %s809_s16, 1  ;;  %p323_p6 = scmp.lt.s32.totalorder (!%p256_p3), %s805_s15, 1  ;;  %vm379_vm0 = vcmask (!%p256_p3), 130048   ;;  %v823_v0 = vmov (!%p256_p3), 0.0   ;;  %vm824_vm1 = vmmov (!%p256_p3), 0   ;;  %vm376_vm2 = vcmask (!%p256_p3), 7168  }
   0x9   : > { %s943_s21 = smov (%p42_p4, %s941_s21), 0  ;;  %259 = sbr.rel (%p256_p3) target bundleno = 829 (0x33d), region = 36 }
   0xa   : > { %719 = vmatprep.subr.bf16.mxu0 (!%p256_p3), %v823_v0  ;;  %380 = vst.msk [vmem:[#allocation4] sm:$0xff] (!%p256_p3), %vm379_vm0, %v823_v0  ;;  %721 = vmatprep.mubr.msk.bf16.mxu0 (!%p256_p3), %vm824_vm1, %v823_v0  ;;  %v825_v4 = vmov (!%p256_p3), -1e+30   ;;  %v387_v5 = vlaneseq (!%p256_p3)  ;;  %vm440_vm3 = vcmask (!%p256_p3), 64512   ;;  %v826_v18 = vmov (!%p256_p3), 0  }
   0xb   : > { %725 = vmatprep.subr.bf16.mxu1 (!%p256_p3), %v823_v0  ;;  %727 = vmatprep.mubr.msk.bf16.mxu1 (!%p256_p3), %vm824_vm1, %v823_v0  ;;  %377 = vst.msk [vmem:[#allocation2] sm:$0xff] (!%p256_p3), %vm376_vm2, %v825_v4  ;;  %378 = vst.msk [vmem:[#allocation3] sm:$0xff] (!%p256_p3), %vm376_vm2, %v823_v0  ;;  %vm476_vm4 = vcmask (!%p256_p3), 1043456   ;;  %vm536_vm5 = vcmask (!%p256_p3), 125952  }
   0xc   : > { %v388_v8 = vshrl.u32 (!%p256_p3), %v387_v5, 7  ;;  %775 = vset.pattern.permute.xlu0 (!%p256_p3), %v826_v18  ;;  %776 = vset.pattern.permute.xlu1 (!%p256_p3), %v826_v18 }
   0xe   : > { %v389_v10 = vsub.s32 (!%p256_p3), 0, %v388_v8 }
  0x10   : > { %s945_s16 = smov (!%p321_p5, %s809_s16), 1  ;;  %s947_s15 = smov (!%p323_p6, %s805_s15), 1 }
  0x11   : > { %s702_s22 = sshll.u32 %s945_s16, 1  ;;  %s359_s7 = scalar_lea.vmem %s932_s3, %s945_s16  ;;  %v464_v39 = vld [vmem:[#allocation4] sm:$0xff] }
  0x12   : > { %s329_s23 = sadd.s32 %s702_s22, %s947_s15  ;;  %v383_v6 = vld [vmem:[%s359_s7] sm:$0x1]  ;;  %v456_v33 = vld [vmem:[#allocation3] sm:$0xff] }
  0x13   : > { %s883_s24 = sshll.u32 %s329_s23, 2  ;;  %v710_v7 = vadd.f32 -1.0, %v383_v6  ;;  %v439_v19 = vld [vmem:[#allocation2] sm:$0xff] }
  0x14   : > { %s342_s27 = scalar_lea.vmem %s930_s1, %s883_s24  ;;  %s331_s30 = scalar_lea.vmem %s929_s0, %s883_s24 }
  0x15   : > { %v382_v1 = vld [vmem:[%s342_s27] sm:$0xf]  ;;  %v385_v9 = vmul.f32 1e+09, %v710_v7  ;;  %s353_s10 = scalar_lea.vmem %s931_s2, %s883_s24  ;;  %s370_s13 = scalar_lea.vmem %s933_s4, %s883_s24 }
  0x16   : > { %v397_v2 = vsel %vm379_vm0, %v382_v1, 0  ;;  %v381_v3 = vld [vmem:[%s331_s30] sm:$0xf] }
  0x17   : > { %720 = vmatpush3.bf16.xpose.msra.mxu0 %v397_v2  ;;  %v390_v11 = vrot.slane %v385_v9, %v389_v10  ;;  %v472_v23 = vld [vmem:[%s353_s10] sm:$0xf] }
  0x18   : > { %v478_v24 = vsel %vm476_vm4, %v472_v23, 0 }
  0x19   : > { %726 = vmatpush3.bf16.msra.mxu1 %v478_v24 }
  0x1e   : > { %722 = vmatmul.mubr.msk.bf16.vlgmr.msra.gmra.mrb[0].mxu0 %vm379_vm0, %v381_v3 }
  0xf1   : > { %v433_v12 = vpop.f32.mrb[0].mxu0 }
  0xf2   : > { %v434_v13 = vadd.f32 %v433_v12, %v390_v11  ;;  %v723_v14 = vpop.f32.mrb[1].mxu0 }
  0xf3   : > { %v436_v15 = vpop.f32.mrb[2].mxu0 }
  0xf4   : > { %v724_v16 = vpop.f32.mrb[3].mxu0  ;;  %v441_v17 = vsel %vm440_vm3, %v434_v13, -inf }
  0xf5   : > { %442 = vmax.xlane.f32.xlu0 %v441_v17 }
 0x182   : > { %v443_v20 = vpop.xlane.xlu0 %442 }
 0x183   : > { %v444_v21 = vmax.f32 %v439_v19, %v443_v20 }
 0x185   : > { %v445_v22 = vsub.f32 %v439_v19, %v444_v21  ;;  %522 = vst.msk [vmem:[#allocation2] sm:$0xff] %vm376_vm2, %v444_v21  ;;  %450 = vperm.xlu0 %775, %v444_v21  }
 0x187   : > { %v446_v31 = vmul.f32 1.442695, %v445_v22 }
 0x204   : > { %v451_v25 = vpop.permute.xlu0 %450 }
 0x205   : > { %v453_v26 = vsub.f32 %v434_v13, %v451_v25 }
 0x207   : > { %v454_v27 = vmul.f32 1.442695, %v453_v26 }
 0x209   : > { %777 = vpow2.f32 %v454_v27 }
 0x20a   : > { %779 = vpow2.f32 %v446_v31 }
 0x213   : > { %v778_v28 = vpop.eup %777 }
 0x214   : > { %v458_v29 = vsel %vm440_vm3, %v778_v28, 0.0  ;;  %v471_v30 = vpack.c.bf16 %v778_v28, %v778_v28  ;;  %v780_v32 = vpop.eup %779 }
 0x215   : > { %459 = vadd.xlane.f32.xlu1 %v458_v29  ;;  %v457_v34 = vmul.f32 %v780_v32, %v456_v33 }
 0x216   : > { %728 = vmatmul.mubr.msk.bf16.vlgmr.msra.gmra.mrb[0].mxu1 %vm440_vm3, %v471_v30 }
 0x226   : > { %467 = vperm.xlu1 %776, %v780_v32  }
 0x2a2   : > { %v460_v35 = vpop.xlane.xlu1 %459 }
 0x2a3   : > { %v461_v36 = vadd.f32 %v460_v35, %v457_v34 }
 0x2a5   : > { %463 = vst.msk [vmem:[#allocation3] sm:$0xff] %vm376_vm2, %v461_v36 }
 0x2a6   : > { %v468_v40 = vpop.permute.xlu1 %467 }
 0x2a7   : > { %v470_v41 = vmul.f32 %v468_v40, %v464_v39 }
 0x2ac   : > { %v527_v37 = vld [vmem:[#allocation3] sm:$0xff] }
 0x2ad   : > { %781 = vrcp.f32 %v527_v37 }
 0x2b7   : > { %v782_v38 = vpop.eup %781 }
 0x2b8   : > { %531 = vperm.xlu1 %776, %v782_v38  }
 0x2e9   : > { %v514_v42 = vpop.f32.mrb[0].mxu1 }
 0x2ea   : > { %v520_v43 = vadd.f32 %v514_v42, %v470_v41  ;;  %v729_v44 = vpop.f32.mrb[1].mxu1 }
 0x2eb   : > { %v517_v45 = vpop.f32.mrb[2].mxu1 }
 0x2ec   : > { %521 = vst.msk [vmem:[#allocation4] sm:$0xff] %vm379_vm0, %v520_v43  ;;  %v730_v46 = vpop.f32.mrb[3].mxu1 }
 0x2f3   : > { %v526_v47 = vld [vmem:[#allocation4] sm:$0xff] }
 0x337   : > { %v532_v48 = vpop.permute.xlu1 %531 }
 0x338   : > { %v534_v49 = vmul.f32 %v532_v48, %v526_v47 }
 0x33a   : > { %v535_v50 = vpack.c.bf16 %v534_v49, %v534_v49 }
 0x33c   : > { %537 = vst.msk [vmem:[%s370_s13] sm:$0xf] %vm536_vm5, %v535_v50 }
 0x33d PF: > { %s14_s19 = sadd.s32 1, %s821_s19   ;;  %s934_s15 = smov %s813_s17 }
 0x33e   : > { %p11_p7 = scmp.ge.s32.totalorder %s14_s19, 6   ;;  %s935_s16 = smov %s817_s18 }
 0x33f   : > { %s936_s17 = smov %s939_s20  ;;  %s937_s18 = smov %s943_s21 }
 0x340   :  { %13 = sbr.rel (!%p11_p7) target bundleno = 3 (0x3), region = 83 }

// kernel: ner_transformer_forward.13
= control target key start
LH: loop header
LB: loop body
LE: loop exit
PB: predicated region body
PF: predicated region fallthrough
CT: control target
= control target key end

     0   :  { %vm28_vm0 = vcmask 261120   ;;  %v220_v0 = vmov 0.0   ;;  %vm221_vm1 = vmmov 0   ;;  %vm178_vm2 = vcmask 257024   ;;  %s293_s1 = inlined_call_operand.vmem [shape: bf16[32,32], index: 1, kind: input, shape index: {}]   ;;  %s294_s0 = inlined_call_operand.vmem [shape: bf16[16,32], index: 0, kind: input, shape index: {}]   ;;  %s295_s3 = inlined_call_operand.vmem [shape: bf16[16,32], index: 3, kind: input, shape index: {}]   ;;  %s296_s2 = inlined_call_operand.vmem [shape: f32[1,32], index: 2, kind: input, shape index: {}]   ;;  %s297_s4 = inlined_call_operand.vmem [shape: f32[1,32], index: 4, kind: input, shape index: {}]   ;;  %s298_s5 = inlined_call_operand.vmem [shape: f32[1,32], index: 5, kind: input, shape index: {}]   ;;  %s299_s6 = inlined_call_operand.vmem [shape: bf16[16,32], index: 6, kind: output, shape index: {}]  }
   0x1   :  { %203 = vmatprep.subr.bf16.mxu0 %v220_v0  ;;  %v213_v1 = vld [vmem:[%s293_s1] sm:$0xff]   ;;  %207 = vmatprep.mubr.msk.bf16.mxu0 %vm221_vm1, %v220_v0  ;;  %29 = vst.msk [vmem:[#allocation2] sm:$0xff] %vm28_vm0, %v220_v0  ;;  %30 = vst.msk [vmem:[#allocation2 + $0x8] sm:$0xff] %vm28_vm0, %v220_v0  ;;  %v214_v2 = vld [vmem:[%s293_s1 + $0x8] sm:$0xff]  }
   0x2   :  { %204 = vmatpush3.bf16.msra.mxu0 %v213_v1  ;;  %v215_v3 = vld [vmem:[%s294_s0] sm:$0xff]  }
   0x3   :  { %205 = vmatprep.subr.bf16.mxu0 %v220_v0  ;;  %v197_v12 = vld [vmem:[%s295_s3] sm:$0xff]  }
   0x4   :  { %v189_v13 = vld [vmem:[%s296_s2] ss:$0 sm:$0xff]  ;;  %v198_v14 = vunpack.c.l.bf16 %v197_v12  ;;  %v199_v17 = vunpack.c.h.bf16 %v197_v12 }
   0x5   :  { %v190_v41 = vld [vmem:[%s297_s4] ss:$0 sm:$0xff] }
   0x6   :  { %206 = vmatpush3.bf16.msra.mxu0 %v214_v2  ;;  %v191_v43 = vld [vmem:[%s298_s5] ss:$0 sm:$0xff] }
   0x8   :  { %v31_v4 = vld [vmem:[#allocation2] sm:$0xff]  ;;  %v32_v6 = vld [vmem:[#allocation2 + $0x8] sm:$0xff] }
   0x9   :  { %208 = vmatmul.mubr.msk.bf16.vlgmr.msra.gmra.mrb[0].mxu0 %vm28_vm0, %v215_v3 }
  0xdc   :  { %v94_v5 = vpop.f32.mrb[0].mxu0 }
  0xdd   :  { %v101_v7 = vadd.f32 %v94_v5, %v31_v4  ;;  %v209_v8 = vpop.f32.mrb[1].mxu0 }
  0xde   :  { %v97_v9 = vpop.f32.mrb[2].mxu0 }
  0xdf   :  { %103 = vst.msk [vmem:[#allocation2] sm:$0xff] %vm28_vm0, %v101_v7  ;;  %v102_v10 = vadd.f32 %v97_v9, %v32_v6  ;;  %v210_v11 = vpop.f32.mrb[3].mxu0 }
  0xe1   :  { %104 = vst.msk [vmem:[#allocation2 + $0x8] sm:$0xff] %vm28_vm0, %v102_v10 }
  0xe6   :  { %v108_v15 = vld [vmem:[#allocation2] sm:$0xff] }
  0xe7   :  { %v117_v16 = vadd.f32 %v189_v13, %v108_v15 }
  0xe8   :  { %v109_v18 = vld [vmem:[#allocation2 + $0x8] sm:$0xff] }
  0xe9   :  { %v123_v19 = vadd.f32 %v198_v14, %v117_v16  ;;  %v118_v20 = vadd.f32 %v189_v13, %v109_v18 }
  0xeb   :  { %v125_v21 = vsel %vm28_vm0, %v123_v19, 0.0  ;;  %v124_v22 = vadd.f32 %v199_v17, %v118_v20 }
  0xec   :  { %126 = vadd.xlane.f32.xlu0 %v125_v21 }
  0xed   :  { %v128_v23 = vsel %vm28_vm0, %v124_v22, 0.0 }
  0xf0   :  { %129 = vadd.xlane.f32.xlu0 %v128_v23 }
 0x179   :  { %v127_v24 = vpop.xlane.xlu0 %126 }
 0x17a   :  { %v132_v25 = vmul.f32 0.03125, %v127_v24 }
 0x17c   :  { %v134_v26 = vsub.f32 %v123_v19, %v132_v25 }
 0x17d   :  { %v130_v27 = vpop.xlane.xlu0 %129 }
 0x17e   :  { %v133_v28 = vmul.f32 0.03125, %v130_v27  ;;  %v136_v29 = vmul.f32 %v134_v26, %v134_v26 }
 0x180   :  { %v135_v30 = vsub.f32 %v124_v22, %v133_v28  ;;  %v138_v31 = vsel %vm28_vm0, %v136_v29, 0.0 }
 0x181   :  { %139 = vadd.xlane.f32.xlu1 %v138_v31 }
 0x182   :  { %v137_v32 = vmul.f32 %v135_v30, %v135_v30 }
 0x184   :  { %v141_v33 = vsel %vm28_vm0, %v137_v32, 0.0 }
 0x185   :  { %142 = vadd.xlane.f32.xlu1 %v141_v33 }
 0x20e   :  { %v140_v34 = vpop.xlane.xlu1 %139 }
 0x20f   :  { %v144_v35 = vmul.f32 0.03125, %v140_v34 }
 0x211   :  { %v146_v36 = vadd.f32 1e-05, %v144_v35 }
 0x212   :  { %v143_v37 = vpop.xlane.xlu1 %142 }
 0x213   :  { %216 = vrsqrt.f32 %v146_v36  ;;  %v145_v38 = vmul.f32 0.03125, %v143_v37 }
 0x215   :  { %v147_v39 = vadd.f32 1e-05, %v145_v38 }
 0x217   :  { %218 = vrsqrt.f32 %v147_v39 }
 0x21d   :  { %v217_v40 = vpop.eup %216 }
 0x21e   :  { %v150_v42 = vmul.f32 %v217_v40, %v134_v26 }
 0x220   :  { %v159_v44 = vmul.f32 %v190_v41, %v150_v42 }
 0x221   :  { %v219_v45 = vpop.eup %218 }
 0x222   :  { %v168_v46 = vadd.f32 %v191_v43, %v159_v44  ;;  %v151_v47 = vmul.f32 %v219_v45, %v135_v30 }
 0x224   :  { %v194_v48 = vpack.c.bf16 %v168_v46, %v168_v46  ;;  %v160_v49 = vmul.f32 %v190_v41, %v151_v47 }
 0x226   :  { %179 = vst.msk [vmem:[%s299_s6] sm:$0xf] %vm178_vm2, %v194_v48  ;;  %v169_v50 = vadd.f32 %v191_v43, %v160_v49 }
 0x228   :  { %v195_v51 = vpack.c.bf16 %v169_v50, %v169_v50 }
 0x22a   :  { %180 = vst.msk [vmem:[%s299_s6 + $0x4] sm:$0xf] %vm178_vm2, %v195_v51 }

// kernel: ner_transformer_forward.19
= control target key start
LH: loop header
LB: loop body
LE: loop exit
PB: predicated region body
PF: predicated region fallthrough
CT: control target
= control target key end

     0   :  { %v117_v0 = vmov 0.0   ;;  %vm118_vm0 = vmmov 0   ;;  %vm45_vm1 = vcmask 261120   ;;  %s157_s1 = inlined_call_operand.vmem [shape: bf16[32,128], index: 1, kind: input, shape index: {}]   ;;  %s158_s0 = inlined_call_operand.vmem [shape: bf16[16,32], index: 0, kind: input, shape index: {}]   ;;  %s159_s2 = inlined_call_operand.vmem [shape: f32[1,128], index: 2, kind: input, shape index: {}]   ;;  %s160_s3 = inlined_call_operand.vmem [shape: f32[16,128], index: 3, kind: output, shape index: {}]  }
   0x1   :  { %104 = vmatprep.subr.bf16.mxu0 %v117_v0  ;;  %v114_v1 = vld [vmem:[%s157_s1] sm:$0xff]   ;;  %108 = vmatprep.mubr.msk.bf16.mxu0 %vm118_vm0, %v117_v0  ;;  %v115_v2 = vld [vmem:[%s157_s1 + $0x8] sm:$0xff]  }
   0x2   :  { %105 = vmatpush3.bf16.msra.mxu0 %v114_v1  ;;  %v116_v3 = vld [vmem:[%s158_s0] sm:$0xff]  }
   0x3   :  { %106 = vmatprep.subr.bf16.mxu0 %v117_v0  ;;  %v96_v4 = vld [vmem:[%s159_s2] ss:$0 sm:$0xff] }
   0x6   :  { %107 = vmatpush3.bf16.msra.mxu0 %v115_v2 }
   0x9   :  { %109 = vmatmul.mubr.msk.bf16.vlgmr.msra.gmra.mrb[0].mxu0 %vm45_vm1, %v116_v3 }
  0xdc   :  { %v83_v5 = vpop.f32.mrb[0].mxu0 }
  0xdd   :  { %v84_v6 = vadd.f32 %v96_v4, %v83_v5  ;;  %v110_v7 = vpop.f32.mrb[1].mxu0 }
  0xde   :  { %v86_v8 = vpop.f32.mrb[2].mxu0 }
  0xdf   :  { %90 = vst [vmem:[%s160_s3] sm:$0xff] %v84_v6  ;;  %v87_v9 = vadd.f32 %v96_v4, %v86_v8  ;;  %v111_v10 = vpop.f32.mrb[3].mxu0 }
  0xe1   :  { %91 = vst [vmem:[%s160_s3 + $0x8] sm:$0xff] %v87_v9 }

// kernel: ner_transformer_forward.14
= control target key start
LH: loop header
LB: loop body
LE: loop exit
PB: predicated region body
PF: predicated region fallthrough
CT: control target
= control target key end

     0   :  { %vm35_vm0 = vcmask 261120   ;;  %v350_v0 = vmov 0.0   ;;  %vm351_vm1 = vmmov 0   ;;  %vm157_vm2 = vcmask 523264   ;;  %s443_s1 = inlined_call_operand.vmem [shape: bf16[32,64], index: 1, kind: input, shape index: {}]   ;;  %s444_s0 = inlined_call_operand.vmem [shape: bf16[16,32], index: 0, kind: input, shape index: {}]   ;;  %s445_s3 = inlined_call_operand.vmem [shape: bf16[64,32], index: 3, kind: input, shape index: {}]   ;;  %s446_s2 = inlined_call_operand.vmem [shape: f32[1,64], index: 2, kind: input, shape index: {}]   ;;  %s447_s4 = inlined_call_operand.vmem [shape: f32[1,32], index: 4, kind: input, shape index: {}]   ;;  %s448_s5 = inlined_call_operand.vmem [shape: f32[1,32], index: 5, kind: input, shape index: {}]   ;;  %s449_s6 = inlined_call_operand.vmem [shape: f32[1,32], index: 6, kind: input, shape index: {}]   ;;  %s450_s7 = inlined_call_operand.vmem [shape: bf16[16,32], index: 7, kind: output, shape index: {}]  }
   0x1   :  { %315 = vmatprep.subr.bf16.mxu0 %v350_v0  ;;  %v337_v1 = vld [vmem:[%s443_s1] sm:$0xff]   ;;  %319 = vmatprep.mubr.msk.bf16.mxu0 %vm351_vm1, %v350_v0  ;;  %36 = vst.msk [vmem:[#allocation2] sm:$0xff] %vm35_vm0, %v350_v0  ;;  %37 = vst.msk [vmem:[#allocation2 + $0x8] sm:$0xff] %vm35_vm0, %v350_v0  ;;  %v338_v2 = vld [vmem:[%s443_s1 + $0x8] sm:$0xff]   ;;  %vm279_vm3 = vcmask 257024  }
   0x2   :  { %323 = vmatprep.subr.bf16.mxu1 %v350_v0  ;;  %331 = vmatprep.mubr.msk.bf16.mxu1 %vm351_vm1, %v350_v0  ;;  %v339_v3 = vld [vmem:[%s444_s0] sm:$0xff]   ;;  %v341_v5 = vld [vmem:[%s445_s3 + $0x8] sm:$0xff]   ;;  %v342_v6 = vld [vmem:[%s445_s3 + $0x10] sm:$0xff]  }
   0x3   :  { %316 = vmatpush3.bf16.msra.mxu0 %v337_v1  ;;  %v340_v4 = vld [vmem:[%s445_s3] sm:$0xff]   ;;  %v343_v7 = vld [vmem:[%s445_s3 + $0x18] sm:$0xff]  }
   0x4   :  { %317 = vmatprep.subr.bf16.mxu0 %v350_v0  ;;  %324 = vmatpush3.bf16.msra.mxu1 %v340_v4  ;;  %v286_v8 = vld [vmem:[%s446_s2] ss:$0 sm:$0xff] }
   0x5   :  { %325 = vmatprep.subr.bf16.mxu1 %v350_v0  ;;  %v304_v33 = vld [vmem:[%s444_s0] sm:$0xff]  }
   0x6   :  { %v296_v34 = vld [vmem:[%s447_s4] ss:$0 sm:$0xff]  ;;  %v305_v35 = vunpack.c.l.bf16 %v304_v33  ;;  %v306_v38 = vunpack.c.h.bf16 %v304_v33 }
   0x7   :  { %318 = vmatpush3.bf16.msra.mxu0 %v338_v2  ;;  %v297_v62 = vld [vmem:[%s448_s5] ss:$0 sm:$0xff] }
   0x8   :  { %326 = vmatpush3.bf16.msra.mxu1 %v341_v5  ;;  %v123_v25 = vld [vmem:[#allocation2] sm:$0xff]  ;;  %v124_v27 = vld [vmem:[#allocation2 + $0x8] sm:$0xff] }
   0x9   :  { %327 = vmatprep.subr.bf16.mxu1 %v350_v0 }
   0xa   :  { %320 = vmatmul.mubr.msk.bf16.vlgmr.msra.gmra.mrb[0].mxu0 %vm35_vm0, %v339_v3 }
   0xc   :  { %328 = vmatpush3.bf16.msra.mxu1 %v342_v6 }
   0xd   :  { %329 = vmatprep.subr.bf16.mxu1 %v350_v0  ;;  %v298_v0 = vld [vmem:[%s449_s6] ss:$0 sm:$0xff] }
  0x10   :  { %330 = vmatpush3.bf16.msra.mxu1 %v343_v7 }
  0xdd   :  { %v106_v9 = vpop.f32.mrb[0].mxu0 }
  0xde   :  { %v321_v10 = vpop.f32.mrb[1].mxu0  ;;  %v107_v12 = vadd.f32 %v286_v8, %v106_v9 }
  0xdf   :  { %v109_v11 = vpop.f32.mrb[2].mxu0 }
  0xe0   :  { %v110_v13 = vadd.f32 %v286_v8, %v109_v11  ;;  %v322_v14 = vpop.f32.mrb[3].mxu0 }
  0xe2   :  { %v113_v15 = vpack.c.bf16 %v110_v13, %v107_v12 }
  0xe4   :  { %v115_v16 = vmul.bf16 1027030327, %v113_v15  ;;  %v114_v22 = vmul.bf16 1056980736, %v113_v15 }
  0xe6   :  { %v116_v17 = vmul.bf16 %v115_v16, %v113_v15 }
  0xe8   :  { %v117_v18 = vmul.bf16 %v116_v17, %v113_v15 }
  0xea   :  { %v118_v19 = vadd.bf16 %v117_v18, %v113_v15 }
  0xec   :  { %v119_v20 = vmul.bf16 1061961548, %v118_v19 }
  0xee   :  { %344 = vtanh.bf16 %v119_v20 }
  0xf9   :  { %v345_v21 = vpop.eup %344 }
  0xfa   :  { %v121_v23 = vadd.bf16 1065369472, %v345_v21 }
  0xfc   :  { %v122_v24 = vmul.bf16 %v121_v23, %v114_v22 }
  0xfe   :  { %332 = vmatmul.mubr.msk.bf16.vlgmr.msra.gmra.mrb[0].mxu1 %vm157_vm2, %v122_v24 }
 0x1d1   :  { %v195_v26 = vpop.f32.mrb[0].mxu1 }
 0x1d2   :  { %v202_v28 = vadd.f32 %v195_v26, %v123_v25  ;;  %v333_v29 = vpop.f32.mrb[1].mxu1 }
 0x1d3   :  { %v198_v30 = vpop.f32.mrb[2].mxu1 }
 0x1d4   :  { %204 = vst.msk [vmem:[#allocation2] sm:$0xff] %vm35_vm0, %v202_v28  ;;  %v203_v31 = vadd.f32 %v198_v30, %v124_v27  ;;  %v334_v32 = vpop.f32.mrb[3].mxu1 }
 0x1d6   :  { %205 = vst.msk [vmem:[#allocation2 + $0x8] sm:$0xff] %vm35_vm0, %v203_v31 }
 0x1db   :  { %v209_v36 = vld [vmem:[#allocation2] sm:$0xff] }
 0x1dc   :  { %v218_v37 = vadd.f32 %v296_v34, %v209_v36 }
 0x1dd   :  { %v210_v39 = vld [vmem:[#allocation2 + $0x8] sm:$0xff] }
 0x1de   :  { %v224_v40 = vadd.f32 %v305_v35, %v218_v37  ;;  %v219_v41 = vadd.f32 %v296_v34, %v210_v39 }
 0x1e0   :  { %v226_v42 = vsel %vm35_vm0, %v224_v40, 0.0  ;;  %v225_v43 = vadd.f32 %v306_v38, %v219_v41 }
 0x1e1   :  { %227 = vadd.xlane.f32.xlu0 %v226_v42 }
 0x1e2   :  { %v229_v44 = vsel %vm35_vm0, %v225_v43, 0.0 }
 0x1e5   :  { %230 = vadd.xlane.f32.xlu0 %v229_v44 }
 0x26e   :  { %v228_v45 = vpop.xlane.xlu0 %227 }
 0x26f   :  { %v233_v46 = vmul.f32 0.03125, %v228_v45 }
 0x271   :  { %v235_v47 = vsub.f32 %v224_v40, %v233_v46 }
 0x272   :  { %v231_v48 = vpop.xlane.xlu0 %230 }
 0x273   :  { %v234_v49 = vmul.f32 0.03125, %v231_v48  ;;  %v237_v50 = vmul.f32 %v235_v47, %v235_v47 }
 0x275   :  { %v236_v51 = vsub.f32 %v225_v43, %v234_v49  ;;  %v239_v52 = vsel %vm35_vm0, %v237_v50, 0.0 }
 0x276   :  { %240 = vadd.xlane.f32.xlu1 %v239_v52 }
 0x277   :  { %v238_v53 = vmul.f32 %v236_v51, %v236_v51 }
 0x279   :  { %v242_v54 = vsel %vm35_vm0, %v238_v53, 0.0 }
 0x27a   :  { %243 = vadd.xlane.f32.xlu1 %v242_v54 }
 0x303   :  { %v241_v55 = vpop.xlane.xlu1 %240 }
 0x304   :  { %v245_v56 = vmul.f32 0.03125, %v241_v55 }
 0x306   :  { %v247_v57 = vadd.f32 1e-05, %v245_v56 }
 0x307   :  { %v244_v58 = vpop.xlane.xlu1 %243 }
 0x308   :  { %346 = vrsqrt.f32 %v247_v57  ;;  %v246_v59 = vmul.f32 0.03125, %v244_v58 }
 0x30a   :  { %v248_v60 = vadd.f32 1e-05, %v246_v59 }
 0x30c   :  { %348 = vrsqrt.f32 %v248_v60 }
 0x312   :  { %v347_v61 = vpop.eup %346 }
 0x313   :  { %v251_v63 = vmul.f32 %v347_v61, %v235_v47 }
 0x315   :  { %v260_v1 = vmul.f32 %v297_v62, %v251_v63 }
 0x316   :  { %v349_v2 = vpop.eup %348 }
 0x317   :  { %v269_v3 = vadd.f32 %v298_v0, %v260_v1  ;;  %v252_v4 = vmul.f32 %v349_v2, %v236_v51 }
 0x319   :  { %v301_v5 = vpack.c.bf16 %v269_v3, %v269_v3  ;;  %v261_v6 = vmul.f32 %v297_v62, %v252_v4 }
 0x31b   :  { %280 = vst.msk [vmem:[%s450_s7] sm:$0xf] %vm279_vm3, %v301_v5  ;;  %v270_v7 = vadd.f32 %v298_v0, %v261_v6 }
 0x31d   :  { %v302_v8 = vpack.c.bf16 %v270_v7, %v270_v7 }
 0x31f   :  { %281 = vst.msk [vmem:[%s450_s7 + $0x4] sm:$0xf] %vm279_vm3, %v302_v8 }

</bundles_post_ra>
